<compile_context>
chip_gen: v5e
topology: v5e:2x2
jax: 0.10.0
libtpu: 0.0.40
codegen_flags: <defaults>
</compile_context>

<pallas_src>
import functools
import math

import jax
import jax.numpy as jnp
from jax import lax
from jax.experimental import pallas as pl
from jax.experimental.pallas import tpu as pltpu


def _mha_kernel(num_heads, depth, need_weights,
                q_ref, kp_ref, vp_ref, wqT_ref, wdT_ref, bq_ref, bd_ref,
                *refs):
    if need_weights:
        out_ref, aw_ref, qp_ref, o_ref = refs
    else:
        out_ref, qp_ref, o_ref = refs
        aw_ref = None

    scale = 1.0 / math.sqrt(depth)

    # Q projection for this seq_q tile: one full-width (tq, D) @ (D, D) MXU matmul.
    # The 1/sqrt(depth) softmax scale is folded in here.
    qp = (jnp.dot(q_ref[0], wqT_ref[...], preferred_element_type=jnp.float32)
          + bq_ref[...]) * scale
    qp_ref[...] = qp.astype(jnp.bfloat16)

    # Per-head attention.  Scores/softmax in f32, PV in bf16 with f32 MXU accum.
    # Head outputs are packed into a (tq, D) slab so the output dense is ONE
    # full-width matmul instead of num_heads narrow K=depth matmuls.
    # TODO(synk): for large num_heads, a head-major layout + lax.fori_loop would
    # bound the live ranges of the f32 (tq, Sk) intermediates across heads.
    for h in range(num_heads):                                    # static, unrolled
        lo, hi = h * depth, (h + 1) * depth
        qh = qp_ref[:, lo:hi]                                     # (tq, depth) bf16
        kh = kp_ref[0, :, lo:hi]                                  # (Sk, depth) bf16
        vh = vp_ref[0, :, lo:hi]                                  # (Sk, depth) bf16

        # qh @ kh.T with the transpose folded into the MXU contraction (no XLU relayout).
        s = lax.dot_general(qh, kh, (((1,), (1,)), ((), ())),
                            preferred_element_type=jnp.float32)   # (tq, Sk)
        m = jnp.max(s, axis=-1, keepdims=True)
        e = jnp.exp(s - m)
        denom = jnp.sum(e, axis=-1, keepdims=True)
        # Exact reciprocal of the (tq, 1) denominator (cheap) -> weights match a
        # true softmax, also used for the PV matmul for consistency.
        w = e * pl.reciprocal(denom, approx=False)
        if aw_ref is not None:
            aw_ref[h] = w                                         # lane-dense (tq, Sk) store

        oh = jnp.dot(w.astype(jnp.bfloat16), vh,
                     preferred_element_type=jnp.float32)          # (tq, depth)
        # TODO(synk): when depth % 128 != 0 this is a masked partial store; packing
        # two heads per store (2x bf16 -> u32 bitcast) would make it lane-dense.
        o_ref[:, lo:hi] = oh.astype(jnp.bfloat16)

    # Output dense: ONE full-width (tq, D) @ (D, D) matmul + bias.
    out_ref[0] = (jnp.dot(o_ref[...], wdT_ref[...],
                          preferred_element_type=jnp.float32) + bd_ref[...])


def _vmem_capacity_bytes():
    """Physical per-core VMEM (generation-aware), conservative fallback (v7x-sized)."""
    try:
        cap = int(pltpu.get_tpu_info().vmem_capacity_bytes)
        if cap > 0:
            return cap
    except Exception:
        pass
    return 64 << 20


def _per_step_bytes(bq, sk, d, h, need_weights, inv_bufs):
    """Estimated per-grid-step VMEM footprint.  inv_bufs = buffer count used for the
    grid-invariant operands (1 when single-buffered, 2 for the default pipeline)."""
    b = 2 * bq * d * 2                              # q tile (bf16, double-buffered)
    b += inv_bufs * 2 * sk * d * 2                  # projected K and V (bf16)
    b += inv_bufs * (2 * d * d * 2 + 2 * d * 4)     # wq^T, wd^T (bf16) + biases (f32)
    b += 2 * bq * d * 4                             # output tile (f32, double-buffered)
    if need_weights:
        b += 2 * h * bq * sk * 4                    # attention-weights tile (f32)
    b += 2 * bq * d * 2                             # qp + head-output slab scratch (bf16)
    b += 3 * bq * sk * 4                            # slack: f32 softmax intermediates
    return b


def _pick_block_q(sq, sk, d, h, need_weights, vmem_cap):
    budget = int(0.75 * vmem_cap)
    cands = [c for c in (1024, 512, 256, 128, 64, 32, 16, 8) if c <= sq and sq % c == 0]
    if sq <= 1024 and sq not in cands:
        cands.append(sq)
    if not cands:
        cands = [sq]
    cands.sort(reverse=True)
    for c in cands:
        if _per_step_bytes(c, sk, d, h, need_weights, inv_bufs=1) <= budget:
            return c
    return cands[-1]


def multi_head_attention(q, k, v, params, num_heads, *, block_q=None, need_weights=True):
    """params = (wq, bq, wk, bk, wv, bv, wd, bd), torch.nn.Linear convention:
    w: (out_features, in_features), b: (out_features,)."""
    B, Sq, D = q.shape
    Sk = k.shape[1]
    assert D % num_heads == 0
    depth = D // num_heads

    wq, bq, wk, bk, wv, bv, wd, bd = params
    # nn.Linear computes y = x @ W.T + b; pre-transpose + pre-cast to bf16 (MXU native).
    wqT = wq.T.astype(jnp.bfloat16)
    wdT = wd.T.astype(jnp.bfloat16)
    bq2 = bq.reshape(1, D).astype(jnp.float32)
    bd2 = bd.reshape(1, D).astype(jnp.float32)

    # Hoisted K/V projections (plain XLA GEMMs, f32 accumulation -> bf16 activations).
    kp = (k.astype(jnp.float32) @ wk.T.astype(jnp.float32) + bk).astype(jnp.bfloat16)
    vp = (v.astype(jnp.float32) @ wv.T.astype(jnp.float32) + bv).astype(jnp.bfloat16)
    qb = q.astype(jnp.bfloat16)

    vmem_cap = _vmem_capacity_bytes()
    if block_q is None:
        block_q = _pick_block_q(Sq, Sk, D, num_heads, need_weights, vmem_cap)
    assert Sq % block_q == 0, "seq_q must be divisible by block_q"
    nq = Sq // block_q

    # Generation-aware scoped-VMEM limit with slack (covers the double-buffered
    # fallback path as well); never below 32 MiB, never above ~physical VMEM.
    fp = _per_step_bytes(block_q, Sk, D, num_heads, need_weights, inv_bufs=2)
    vmem_limit = min(int(0.92 * vmem_cap), max(32 << 20, int(1.25 * fp)))

    kernel = functools.partial(_mha_kernel, num_heads, depth, need_weights)

    flops = 2 * B * (Sq * D * D                         # Q projection
                     + 2 * num_heads * Sq * Sk * depth  # QK^T + PV
                     + Sq * D * D)                      # output dense
    bytes_accessed = (B * Sq * D * 2 + 2 * B * Sk * D * 2
                      + 2 * D * D * 2 + 2 * D * 4
                      + B * Sq * D * 4
                      + (B * num_heads * Sq * Sk * 4 if need_weights else 0))
    cost = pl.CostEstimate(flops=flops, transcendentals=B * num_heads * Sq * Sk,
                           bytes_accessed=bytes_accessed)

    def run(single_buffer_invariants):
        def inv_spec(shape, index_map):
            # Grid-invariant (per batch element) operands: single-buffer to halve
            # their VMEM residency -- their block is never re-fetched across seq_q.
            if single_buffer_invariants:
                return pl.BlockSpec(shape, index_map, pipeline_mode=pl.Buffered(1))
            return pl.BlockSpec(shape, index_map)

        in_specs = [
            pl.BlockSpec((1, block_q, D), lambda b, i: (b, i, 0)),   # q tile
            inv_spec((1, Sk, D), lambda b, i: (b, 0, 0)),            # projected K
            inv_spec((1, Sk, D), lambda b, i: (b, 0, 0)),            # projected V
            inv_spec((D, D), lambda b, i: (0, 0)),                   # wq^T
            inv_spec((D, D), lambda b, i: (0, 0)),                   # wd^T
            inv_spec((1, D), lambda b, i: (0, 0)),                   # bq
            inv_spec((1, D), lambda b, i: (0, 0)),                   # bd
        ]
        out_spec_o = pl.BlockSpec((1, block_q, D), lambda b, i: (b, i, 0))
        if need_weights:
            out_specs = (out_spec_o,
                         pl.BlockSpec((num_heads, block_q, Sk), lambda b, i: (b, i, 0)))
            out_shapes = (jax.ShapeDtypeStruct((B, Sq, D), jnp.float32),
                          jax.ShapeDtypeStruct((B * num_heads, Sq, Sk), jnp.float32))
        else:
            out_specs = out_spec_o
            out_shapes = jax.ShapeDtypeStruct((B, Sq, D), jnp.float32)

        scratch_shapes = [
            pltpu.VMEM((block_q, D), jnp.bfloat16),   # projected Q tile
            pltpu.VMEM((block_q, D), jnp.bfloat16),   # packed per-head output slab
        ]

        return pl.pallas_call(
            kernel,
            out_shape=out_shapes,
            grid=(B, nq),
            in_specs=in_specs,
            out_specs=out_specs,
            scratch_shapes=scratch_shapes,
            compiler_params=pltpu.CompilerParams(
                # No cross-iteration scratch carry -> both axes independent; lets the
                # v7x megacore shard the seq_q axis as well as batch.
                dimension_semantics=("parallel", "parallel"),
                vmem_limit_bytes=vmem_limit),
            cost_estimate=cost,
        )(qb, kp, vp, wqT, wdT, bq2, bd2)

    use_sb = hasattr(pl, "Buffered")
    try:
        return run(use_sb)
    except Exception:
        # Compatibility fallback: some jax versions reject pipeline_mode / Buffered(1);
        # the default double-buffered pipeline is still correct (just uses more VMEM).
        if not use_sb:
            raise
        return run(False)


def _reference_mha(q, k, v, params, num_heads):
    """Pure-JAX f32 transcription of the PyTorch forward (mask=None)."""
    wq, bq, wk, bk, wv, bv, wd, bd = params
    B, Sq, D = q.shape
    depth = D // num_heads
    qp = q @ wq.T + bq
    kp = k @ wk.T + bk
    vp = v @ wv.T + bv

    def split(x):
        b, s, _ = x.shape
        return x.reshape(b, s, num_heads, depth).transpose(0, 2, 1, 3).reshape(
            b * num_heads, s, depth)

    qh, kh, vh = split(qp), split(kp), split(vp)
    s = jnp.einsum('bqd,bkd->bqk', qh, kh) / math.sqrt(depth)
    w = jax.nn.softmax(s, axis=-1)
    o = jnp.einsum('bqk,bkd->bqd', w, vh)
    o = o.reshape(B, num_heads, Sq, depth).transpose(0, 2, 1, 3).reshape(B, Sq, D)
    out = o @ wd.T + bd
    return out, w


if __name__ == "__main__":
    d_model = 32
    num_heads = 4
    B, S = 2, 8

    key = jax.random.PRNGKey(0)
    keys = jax.random.split(key, 12)

    bound = 1.0 / math.sqrt(d_model)  # torch.nn.Linear-style uniform init
    def lin(kw, kb):
        w = jax.random.uniform(kw, (d_model, d_model), jnp.float32, -bound, bound)
        b = jax.random.uniform(kb, (d_model,), jnp.float32, -bound, bound)
        return w, b

    wq, bq = lin(keys[0], keys[1])
    wk, bk = lin(keys[2], keys[3])
    wv, bv = lin(keys[4], keys[5])
    wd, bd = lin(keys[6], keys[7])
    params = (wq, bq, wk, bk, wv, bv, wd, bd)

    q = jax.random.normal(keys[8], (B, S, d_model), jnp.float32)
    k = jax.random.normal(keys[9], (B, S, d_model), jnp.float32)
    v = jax.random.normal(keys[10], (B, S, d_model), jnp.float32)

    out, attn_w = multi_head_attention(q, k, v, params, num_heads)
    jax.block_until_ready((out, attn_w))

    ref_out, ref_w = _reference_mha(q, k, v, params, num_heads)
    assert out.shape == (B, S, d_model)
    assert attn_w.shape == (B * num_heads, S, S)
    # bf16 matmul operands (f32 accumulation) -> loosened tolerances vs f32 reference.
    assert jnp.allclose(out, ref_out, atol=2e-2, rtol=2e-2)
    assert jnp.allclose(attn_w, ref_w, atol=2e-2, rtol=2e-2)

    # Weights-free path (saves the dominant f32 HBM write when caller ignores them).
    out_nw = multi_head_attention(q, k, v, params, num_heads, need_weights=False)
    jax.block_until_ready(out_nw)
    assert jnp.allclose(out_nw, ref_out, atol=2e-2, rtol=2e-2)

    print("KERNEL_OK")
</pallas_src>

<mosaic_0001>
module attributes {stable_mosaic.version = 11 : i64} {
  func.func @_mha_kernel(%arg0: i32, %arg1: i32, %arg2: memref<1x8x32xbf16, #tpu.memory_space<vmem>>, %arg3: memref<1x8x32xbf16, #tpu.memory_space<vmem>>, %arg4: memref<1x8x32xbf16, #tpu.memory_space<vmem>>, %arg5: memref<32x32xbf16, #tpu.memory_space<vmem>>, %arg6: memref<32x32xbf16, #tpu.memory_space<vmem>>, %arg7: memref<1x32xf32, #tpu.memory_space<vmem>>, %arg8: memref<1x32xf32, #tpu.memory_space<vmem>>, %arg9: memref<1x8x32xf32, #tpu.memory_space<vmem>>, %arg10: memref<4x8x8xf32, #tpu.memory_space<vmem>>, %arg11: memref<8x32xbf16, #tpu.memory_space<vmem>>, %arg12: memref<8x32xbf16, #tpu.memory_space<vmem>>) attributes {dimension_semantics = [#tpu.dimension_semantics<parallel>, #tpu.dimension_semantics<parallel>], iteration_bounds = array<i64: 2, 1>, scalar_prefetch = 0 : i64, scratch_operands = 2 : i64, tpu.core_type = #tpu.core_type<tc>, window_params = [{transform_indices = @transform_0, window_bounds = array<i64: 1, 8, 32>}, {pipeline_mode = #tpu.pipeline_mode<synchronous>, transform_indices = @transform_1, window_bounds = array<i64: 1, 8, 32>}, {pipeline_mode = #tpu.pipeline_mode<synchronous>, transform_indices = @transform_2, window_bounds = array<i64: 1, 8, 32>}, {pipeline_mode = #tpu.pipeline_mode<synchronous>, transform_indices = @transform_3, window_bounds = array<i64: 32, 32>}, {pipeline_mode = #tpu.pipeline_mode<synchronous>, transform_indices = @transform_4, window_bounds = array<i64: 32, 32>}, {pipeline_mode = #tpu.pipeline_mode<synchronous>, transform_indices = @transform_5, window_bounds = array<i64: 1, 32>}, {pipeline_mode = #tpu.pipeline_mode<synchronous>, transform_indices = @transform_6, window_bounds = array<i64: 1, 32>}, {transform_indices = @transform_7, window_bounds = array<i64: 1, 8, 32>}, {transform_indices = @transform_8, window_bounds = array<i64: 4, 8, 8>}]} {
    %c0 = arith.constant 0 : index
    %c0_0 = arith.constant 0 : index
    %c0_1 = arith.constant 0 : index
    %0 = vector.load %arg2[%c0, %c0_0, %c0_1] : memref<1x8x32xbf16, #tpu.memory_space<vmem>>, vector<1x8x32xbf16>
    %1 = vector.shape_cast %0 : vector<1x8x32xbf16> to vector<8x32xbf16>
    %c0_2 = arith.constant 0 : index
    %c0_3 = arith.constant 0 : index
    %2 = vector.load %arg5[%c0_2, %c0_3] : memref<32x32xbf16, #tpu.memory_space<vmem>>, vector<32x32xbf16>
    %cst = arith.constant dense<0.000000e+00> : vector<8x32xf32>
    %3 = tpu.matmul %1, %2, %cst {dimension_numbers = #tpu.dot_dimension_numbers<[1], [0], [0], [1], [0, 0, 1, 1], [], []>} : vector<8x32xbf16>, vector<32x32xbf16>, vector<8x32xf32> -> vector<8x32xf32>
    %c0_4 = arith.constant 0 : index
    %c0_5 = arith.constant 0 : index
    %4 = vector.load %arg7[%c0_4, %c0_5] : memref<1x32xf32, #tpu.memory_space<vmem>>, vector<1x32xf32>
    %5 = vector.broadcast %4 : vector<1x32xf32> to vector<8x32xf32>
    %6 = arith.addf %3, %5 : vector<8x32xf32>
    %cst_6 = arith.constant 0.353553385 : f32
    %7 = vector.broadcast %cst_6 : f32 to vector<8x32xf32>
    %8 = arith.mulf %6, %7 : vector<8x32xf32>
    %9 = arith.truncf %8 : vector<8x32xf32> to vector<8x32xbf16>
    %c0_7 = arith.constant 0 : index
    %c0_8 = arith.constant 0 : index
    %10 = vector.load %arg11[%c0_7, %c0_8] : memref<8x32xbf16, #tpu.memory_space<vmem>>, vector<8x32xbf16>
    tpu.vector_store %arg11[%c0_7, %c0_8], %9 {strides = array<i32>} : memref<8x32xbf16, #tpu.memory_space<vmem>>, vector<8x32xbf16>,
    %c0_9 = arith.constant 0 : index
    %c0_10 = arith.constant 0 : index
    %11 = vector.load %arg11[%c0_9, %c0_10] : memref<8x32xbf16, #tpu.memory_space<vmem>>, vector<8x8xbf16>
    %c0_11 = arith.constant 0 : index
    %c0_12 = arith.constant 0 : index
    %c0_13 = arith.constant 0 : index
    %12 = vector.load %arg3[%c0_11, %c0_12, %c0_13] : memref<1x8x32xbf16, #tpu.memory_space<vmem>>, vector<1x8x8xbf16>
    %13 = vector.shape_cast %12 : vector<1x8x8xbf16> to vector<8x8xbf16>
    %c0_14 = arith.constant 0 : index
    %c0_15 = arith.constant 0 : index
    %c0_16 = arith.constant 0 : index
    %14 = vector.load %arg4[%c0_14, %c0_15, %c0_16] : memref<1x8x32xbf16, #tpu.memory_space<vmem>>, vector<1x8x8xbf16>
    %15 = vector.shape_cast %14 : vector<1x8x8xbf16> to vector<8x8xbf16>
    %cst_17 = arith.constant dense<0.000000e+00> : vector<8x8xf32>
    %16 = tpu.matmul %11, %13, %cst_17 {dimension_numbers = #tpu.dot_dimension_numbers<[1], [1], [0], [0], [0, 0, 1, 0], [], []>} : vector<8x8xbf16>, vector<8x8xbf16>, vector<8x8xf32> -> vector<8x8xf32>
    %cst_18 = arith.constant dense<0xFF800000> : vector<8xf32>
    %17 = vector.multi_reduction <maximumf>, %16, %cst_18 [1] : vector<8x8xf32> to vector<8xf32>
    %18 = vector.shape_cast %17 : vector<8xf32> to vector<8x1xf32>
    %19 = vector.broadcast %18 : vector<8x1xf32> to vector<8x8xf32>
    %20 = arith.subf %16, %19 : vector<8x8xf32>
    %21 = math.exp %20 : vector<8x8xf32>
    %cst_19 = arith.constant dense<0.000000e+00> : vector<8xf32>
    %22 = vector.multi_reduction <add>, %21, %cst_19 [1] : vector<8x8xf32> to vector<8xf32>
    %23 = vector.shape_cast %22 : vector<8xf32> to vector<8x1xf32>
    %24 = tpu.reciprocal %23 : vector<8x1xf32> -> vector<8x1xf32>
    %25 = vector.broadcast %24 : vector<8x1xf32> to vector<8x8xf32>
    %26 = arith.mulf %21, %25 : vector<8x8xf32>
    %c0_20 = arith.constant 0 : index
    %c0_21 = arith.constant 0 : index
    %c0_22 = arith.constant 0 : index
    %27 = vector.load %arg10[%c0_20, %c0_21, %c0_22] : memref<4x8x8xf32, #tpu.memory_space<vmem>>, vector<1x8x8xf32>
    %28 = vector.shape_cast %27 : vector<1x8x8xf32> to vector<8x8xf32>
    %29 = vector.shape_cast %26 : vector<8x8xf32> to vector<1x8x8xf32>
    tpu.vector_store %arg10[%c0_20, %c0_21, %c0_22], %29 {strides = array<i32>} : memref<4x8x8xf32, #tpu.memory_space<vmem>>, vector<1x8x8xf32>,
    %30 = arith.truncf %26 : vector<8x8xf32> to vector<8x8xbf16>
    %cst_23 = arith.constant dense<0.000000e+00> : vector<8x8xf32>
    %31 = tpu.matmul %30, %15, %cst_23 {dimension_numbers = #tpu.dot_dimension_numbers<[1], [0], [0], [1], [0, 0, 1, 1], [], []>} : vector<8x8xbf16>, vector<8x8xbf16>, vector<8x8xf32> -> vector<8x8xf32>
    %32 = arith.truncf %31 : vector<8x8xf32> to vector<8x8xbf16>
    %c0_24 = arith.constant 0 : index
    %c0_25 = arith.constant 0 : index
    %33 = vector.load %arg12[%c0_24, %c0_25] : memref<8x32xbf16, #tpu.memory_space<vmem>>, vector<8x8xbf16>
    tpu.vector_store %arg12[%c0_24, %c0_25], %32 {strides = array<i32>} : memref<8x32xbf16, #tpu.memory_space<vmem>>, vector<8x8xbf16>,
    %c0_26 = arith.constant 0 : index
    %c8 = arith.constant 8 : index
    %34 = vector.load %arg11[%c0_26, %c8] : memref<8x32xbf16, #tpu.memory_space<vmem>>, vector<8x8xbf16>
    %c0_27 = arith.constant 0 : index
    %c0_28 = arith.constant 0 : index
    %c8_29 = arith.constant 8 : index
    %35 = vector.load %arg3[%c0_27, %c0_28, %c8_29] : memref<1x8x32xbf16, #tpu.memory_space<vmem>>, vector<1x8x8xbf16>
    %36 = vector.shape_cast %35 : vector<1x8x8xbf16> to vector<8x8xbf16>
    %c0_30 = arith.constant 0 : index
    %c0_31 = arith.constant 0 : index
    %c8_32 = arith.constant 8 : index
    %37 = vector.load %arg4[%c0_30, %c0_31, %c8_32] : memref<1x8x32xbf16, #tpu.memory_space<vmem>>, vector<1x8x8xbf16>
    %38 = vector.shape_cast %37 : vector<1x8x8xbf16> to vector<8x8xbf16>
    %cst_33 = arith.constant dense<0.000000e+00> : vector<8x8xf32>
    %39 = tpu.matmul %34, %36, %cst_33 {dimension_numbers = #tpu.dot_dimension_numbers<[1], [1], [0], [0], [0, 0, 1, 0], [], []>} : vector<8x8xbf16>, vector<8x8xbf16>, vector<8x8xf32> -> vector<8x8xf32>
    %cst_34 = arith.constant dense<0xFF800000> : vector<8xf32>
    %40 = vector.multi_reduction <maximumf>, %39, %cst_34 [1] : vector<8x8xf32> to vector<8xf32>
    %41 = vector.shape_cast %40 : vector<8xf32> to vector<8x1xf32>
    %42 = vector.broadcast %41 : vector<8x1xf32> to vector<8x8xf32>
    %43 = arith.subf %39, %42 : vector<8x8xf32>
    %44 = math.exp %43 : vector<8x8xf32>
    %cst_35 = arith.constant dense<0.000000e+00> : vector<8xf32>
    %45 = vector.multi_reduction <add>, %44, %cst_35 [1] : vector<8x8xf32> to vector<8xf32>
    %46 = vector.shape_cast %45 : vector<8xf32> to vector<8x1xf32>
    %47 = tpu.reciprocal %46 : vector<8x1xf32> -> vector<8x1xf32>
    %48 = vector.broadcast %47 : vector<8x1xf32> to vector<8x8xf32>
    %49 = arith.mulf %44, %48 : vector<8x8xf32>
    %c1 = arith.constant 1 : index
    %c0_36 = arith.constant 0 : index
    %c0_37 = arith.constant 0 : index
    %50 = vector.load %arg10[%c1, %c0_36, %c0_37] : memref<4x8x8xf32, #tpu.memory_space<vmem>>, vector<1x8x8xf32>
    %51 = vector.shape_cast %50 : vector<1x8x8xf32> to vector<8x8xf32>
    %52 = vector.shape_cast %49 : vector<8x8xf32> to vector<1x8x8xf32>
    tpu.vector_store %arg10[%c1, %c0_36, %c0_37], %52 {strides = array<i32>} : memref<4x8x8xf32, #tpu.memory_space<vmem>>, vector<1x8x8xf32>,
    %53 = arith.truncf %49 : vector<8x8xf32> to vector<8x8xbf16>
    %cst_38 = arith.constant dense<0.000000e+00> : vector<8x8xf32>
    %54 = tpu.matmul %53, %38, %cst_38 {dimension_numbers = #tpu.dot_dimension_numbers<[1], [0], [0], [1], [0, 0, 1, 1], [], []>} : vector<8x8xbf16>, vector<8x8xbf16>, vector<8x8xf32> -> vector<8x8xf32>
    %55 = arith.truncf %54 : vector<8x8xf32> to vector<8x8xbf16>
    %c0_39 = arith.constant 0 : index
    %c8_40 = arith.constant 8 : index
    %56 = vector.load %arg12[%c0_39, %c8_40] : memref<8x32xbf16, #tpu.memory_space<vmem>>, vector<8x8xbf16>
    tpu.vector_store %arg12[%c0_39, %c8_40], %55 {strides = array<i32>} : memref<8x32xbf16, #tpu.memory_space<vmem>>, vector<8x8xbf16>,
    %c0_41 = arith.constant 0 : index
    %c16 = arith.constant 16 : index
    %57 = vector.load %arg11[%c0_41, %c16] : memref<8x32xbf16, #tpu.memory_space<vmem>>, vector<8x8xbf16>
    %c0_42 = arith.constant 0 : index
    %c0_43 = arith.constant 0 : index
    %c16_44 = arith.constant 16 : index
    %58 = vector.load %arg3[%c0_42, %c0_43, %c16_44] : memref<1x8x32xbf16, #tpu.memory_space<vmem>>, vector<1x8x8xbf16>
    %59 = vector.shape_cast %58 : vector<1x8x8xbf16> to vector<8x8xbf16>
    %c0_45 = arith.constant 0 : index
    %c0_46 = arith.constant 0 : index
    %c16_47 = arith.constant 16 : index
    %60 = vector.load %arg4[%c0_45, %c0_46, %c16_47] : memref<1x8x32xbf16, #tpu.memory_space<vmem>>, vector<1x8x8xbf16>
    %61 = vector.shape_cast %60 : vector<1x8x8xbf16> to vector<8x8xbf16>
    %cst_48 = arith.constant dense<0.000000e+00> : vector<8x8xf32>
    %62 = tpu.matmul %57, %59, %cst_48 {dimension_numbers = #tpu.dot_dimension_numbers<[1], [1], [0], [0], [0, 0, 1, 0], [], []>} : vector<8x8xbf16>, vector<8x8xbf16>, vector<8x8xf32> -> vector<8x8xf32>
    %cst_49 = arith.constant dense<0xFF800000> : vector<8xf32>
    %63 = vector.multi_reduction <maximumf>, %62, %cst_49 [1] : vector<8x8xf32> to vector<8xf32>
    %64 = vector.shape_cast %63 : vector<8xf32> to vector<8x1xf32>
    %65 = vector.broadcast %64 : vector<8x1xf32> to vector<8x8xf32>
    %66 = arith.subf %62, %65 : vector<8x8xf32>
    %67 = math.exp %66 : vector<8x8xf32>
    %cst_50 = arith.constant dense<0.000000e+00> : vector<8xf32>
    %68 = vector.multi_reduction <add>, %67, %cst_50 [1] : vector<8x8xf32> to vector<8xf32>
    %69 = vector.shape_cast %68 : vector<8xf32> to vector<8x1xf32>
    %70 = tpu.reciprocal %69 : vector<8x1xf32> -> vector<8x1xf32>
    %71 = vector.broadcast %70 : vector<8x1xf32> to vector<8x8xf32>
    %72 = arith.mulf %67, %71 : vector<8x8xf32>
    %c2 = arith.constant 2 : index
    %c0_51 = arith.constant 0 : index
    %c0_52 = arith.constant 0 : index
    %73 = vector.load %arg10[%c2, %c0_51, %c0_52] : memref<4x8x8xf32, #tpu.memory_space<vmem>>, vector<1x8x8xf32>
    %74 = vector.shape_cast %73 : vector<1x8x8xf32> to vector<8x8xf32>
    %75 = vector.shape_cast %72 : vector<8x8xf32> to vector<1x8x8xf32>
    tpu.vector_store %arg10[%c2, %c0_51, %c0_52], %75 {strides = array<i32>} : memref<4x8x8xf32, #tpu.memory_space<vmem>>, vector<1x8x8xf32>,
    %76 = arith.truncf %72 : vector<8x8xf32> to vector<8x8xbf16>
    %cst_53 = arith.constant dense<0.000000e+00> : vector<8x8xf32>
    %77 = tpu.matmul %76, %61, %cst_53 {dimension_numbers = #tpu.dot_dimension_numbers<[1], [0], [0], [1], [0, 0, 1, 1], [], []>} : vector<8x8xbf16>, vector<8x8xbf16>, vector<8x8xf32> -> vector<8x8xf32>
    %78 = arith.truncf %77 : vector<8x8xf32> to vector<8x8xbf16>
    %c0_54 = arith.constant 0 : index
    %c16_55 = arith.constant 16 : index
    %79 = vector.load %arg12[%c0_54, %c16_55] : memref<8x32xbf16, #tpu.memory_space<vmem>>, vector<8x8xbf16>
    tpu.vector_store %arg12[%c0_54, %c16_55], %78 {strides = array<i32>} : memref<8x32xbf16, #tpu.memory_space<vmem>>, vector<8x8xbf16>,
    %c0_56 = arith.constant 0 : index
    %c24 = arith.constant 24 : index
    %80 = vector.load %arg11[%c0_56, %c24] : memref<8x32xbf16, #tpu.memory_space<vmem>>, vector<8x8xbf16>
    %c0_57 = arith.constant 0 : index
    %c0_58 = arith.constant 0 : index
    %c24_59 = arith.constant 24 : index
    %81 = vector.load %arg3[%c0_57, %c0_58, %c24_59] : memref<1x8x32xbf16, #tpu.memory_space<vmem>>, vector<1x8x8xbf16>
    %82 = vector.shape_cast %81 : vector<1x8x8xbf16> to vector<8x8xbf16>
    %c0_60 = arith.constant 0 : index
    %c0_61 = arith.constant 0 : index
    %c24_62 = arith.constant 24 : index
    %83 = vector.load %arg4[%c0_60, %c0_61, %c24_62] : memref<1x8x32xbf16, #tpu.memory_space<vmem>>, vector<1x8x8xbf16>
    %84 = vector.shape_cast %83 : vector<1x8x8xbf16> to vector<8x8xbf16>
    %cst_63 = arith.constant dense<0.000000e+00> : vector<8x8xf32>
    %85 = tpu.matmul %80, %82, %cst_63 {dimension_numbers = #tpu.dot_dimension_numbers<[1], [1], [0], [0], [0, 0, 1, 0], [], []>} : vector<8x8xbf16>, vector<8x8xbf16>, vector<8x8xf32> -> vector<8x8xf32>
    %cst_64 = arith.constant dense<0xFF800000> : vector<8xf32>
    %86 = vector.multi_reduction <maximumf>, %85, %cst_64 [1] : vector<8x8xf32> to vector<8xf32>
    %87 = vector.shape_cast %86 : vector<8xf32> to vector<8x1xf32>
    %88 = vector.broadcast %87 : vector<8x1xf32> to vector<8x8xf32>
    %89 = arith.subf %85, %88 : vector<8x8xf32>
    %90 = math.exp %89 : vector<8x8xf32>
    %cst_65 = arith.constant dense<0.000000e+00> : vector<8xf32>
    %91 = vector.multi_reduction <add>, %90, %cst_65 [1] : vector<8x8xf32> to vector<8xf32>
    %92 = vector.shape_cast %91 : vector<8xf32> to vector<8x1xf32>
    %93 = tpu.reciprocal %92 : vector<8x1xf32> -> vector<8x1xf32>
    %94 = vector.broadcast %93 : vector<8x1xf32> to vector<8x8xf32>
    %95 = arith.mulf %90, %94 : vector<8x8xf32>
    %c3 = arith.constant 3 : index
    %c0_66 = arith.constant 0 : index
    %c0_67 = arith.constant 0 : index
    %96 = vector.load %arg10[%c3, %c0_66, %c0_67] : memref<4x8x8xf32, #tpu.memory_space<vmem>>, vector<1x8x8xf32>
    %97 = vector.shape_cast %96 : vector<1x8x8xf32> to vector<8x8xf32>
    %98 = vector.shape_cast %95 : vector<8x8xf32> to vector<1x8x8xf32>
    tpu.vector_store %arg10[%c3, %c0_66, %c0_67], %98 {strides = array<i32>} : memref<4x8x8xf32, #tpu.memory_space<vmem>>, vector<1x8x8xf32>,
    %99 = arith.truncf %95 : vector<8x8xf32> to vector<8x8xbf16>
    %cst_68 = arith.constant dense<0.000000e+00> : vector<8x8xf32>
    %100 = tpu.matmul %99, %84, %cst_68 {dimension_numbers = #tpu.dot_dimension_numbers<[1], [0], [0], [1], [0, 0, 1, 1], [], []>} : vector<8x8xbf16>, vector<8x8xbf16>, vector<8x8xf32> -> vector<8x8xf32>
    %101 = arith.truncf %100 : vector<8x8xf32> to vector<8x8xbf16>
    %c0_69 = arith.constant 0 : index
    %c24_70 = arith.constant 24 : index
    %102 = vector.load %arg12[%c0_69, %c24_70] : memref<8x32xbf16, #tpu.memory_space<vmem>>, vector<8x8xbf16>
    tpu.vector_store %arg12[%c0_69, %c24_70], %101 {strides = array<i32>} : memref<8x32xbf16, #tpu.memory_space<vmem>>, vector<8x8xbf16>,
    %c0_71 = arith.constant 0 : index
    %c0_72 = arith.constant 0 : index
    %103 = vector.load %arg12[%c0_71, %c0_72] : memref<8x32xbf16, #tpu.memory_space<vmem>>, vector<8x32xbf16>
    %c0_73 = arith.constant 0 : index
    %c0_74 = arith.constant 0 : index
    %104 = vector.load %arg6[%c0_73, %c0_74] : memref<32x32xbf16, #tpu.memory_space<vmem>>, vector<32x32xbf16>
    %cst_75 = arith.constant dense<0.000000e+00> : vector<8x32xf32>
    %105 = tpu.matmul %103, %104, %cst_75 {dimension_numbers = #tpu.dot_dimension_numbers<[1], [0], [0], [1], [0, 0, 1, 1], [], []>} : vector<8x32xbf16>, vector<32x32xbf16>, vector<8x32xf32> -> vector<8x32xf32>
    %c0_76 = arith.constant 0 : index
    %c0_77 = arith.constant 0 : index
    %106 = vector.load %arg8[%c0_76, %c0_77] : memref<1x32xf32, #tpu.memory_space<vmem>>, vector<1x32xf32>
    %107 = vector.broadcast %106 : vector<1x32xf32> to vector<8x32xf32>
    %108 = arith.addf %105, %107 : vector<8x32xf32>
    %c0_78 = arith.constant 0 : index
    %c0_79 = arith.constant 0 : index
    %c0_80 = arith.constant 0 : index
    %109 = vector.load %arg9[%c0_78, %c0_79, %c0_80] : memref<1x8x32xf32, #tpu.memory_space<vmem>>, vector<1x8x32xf32>
    %110 = vector.shape_cast %109 : vector<1x8x32xf32> to vector<8x32xf32>
    %111 = vector.shape_cast %108 : vector<8x32xf32> to vector<1x8x32xf32>
    tpu.vector_store %arg9[%c0_78, %c0_79, %c0_80], %111 {strides = array<i32>} : memref<1x8x32xf32, #tpu.memory_space<vmem>>, vector<1x8x32xf32>,
    return
  }
  func.func @transform_0(%arg0: i32, %arg1: i32) -> (i32, i32, i32) {
    %c0_i32 = arith.constant 0 : i32
    %c0_i32_0 = arith.constant 0 : i32
    return %arg0, %arg1, %c0_i32 : i32, i32, i32
  }
  func.func @transform_1(%arg0: i32, %arg1: i32) -> (i32, i32, i32) {
    %c0_i32 = arith.constant 0 : i32
    %c0_i32_0 = arith.constant 0 : i32
    %c0_i32_1 = arith.constant 0 : i32
    return %arg0, %c0_i32, %c0_i32_0 : i32, i32, i32
  }
  func.func @transform_2(%arg0: i32, %arg1: i32) -> (i32, i32, i32) {
    %c0_i32 = arith.constant 0 : i32
    %c0_i32_0 = arith.constant 0 : i32
    %c0_i32_1 = arith.constant 0 : i32
    return %arg0, %c0_i32, %c0_i32_0 : i32, i32, i32
  }
  func.func @transform_3(%arg0: i32, %arg1: i32) -> (i32, i32) {
    %c0_i32 = arith.constant 0 : i32
    %c0_i32_0 = arith.constant 0 : i32
    %c0_i32_1 = arith.constant 0 : i32
    return %c0_i32, %c0_i32_0 : i32, i32
  }
  func.func @transform_4(%arg0: i32, %arg1: i32) -> (i32, i32) {
    %c0_i32 = arith.constant 0 : i32
    %c0_i32_0 = arith.constant 0 : i32
    %c0_i32_1 = arith.constant 0 : i32
    return %c0_i32, %c0_i32_0 : i32, i32
  }
  func.func @transform_5(%arg0: i32, %arg1: i32) -> (i32, i32) {
    %c0_i32 = arith.constant 0 : i32
    %c0_i32_0 = arith.constant 0 : i32
    %c0_i32_1 = arith.constant 0 : i32
    return %c0_i32, %c0_i32_0 : i32, i32
  }
  func.func @transform_6(%arg0: i32, %arg1: i32) -> (i32, i32) {
    %c0_i32 = arith.constant 0 : i32
    %c0_i32_0 = arith.constant 0 : i32
    %c0_i32_1 = arith.constant 0 : i32
    return %c0_i32, %c0_i32_0 : i32, i32
  }
  func.func @transform_7(%arg0: i32, %arg1: i32) -> (i32, i32, i32) {
    %c0_i32 = arith.constant 0 : i32
    %c0_i32_0 = arith.constant 0 : i32
    return %arg0, %arg1, %c0_i32 : i32, i32, i32
  }
  func.func @transform_8(%arg0: i32, %arg1: i32) -> (i32, i32, i32) {
    %c0_i32 = arith.constant 0 : i32
    %c0_i32_0 = arith.constant 0 : i32
    return %arg0, %arg1, %c0_i32 : i32, i32, i32
  }
}

module attributes {stable_mosaic.version = 11 : i64} {
  func.func @_mha_kernel(%arg0: i32, %arg1: i32, %arg2: memref<1x8x32xbf16, #tpu.memory_space<vmem>>, %arg3: memref<1x8x32xbf16, #tpu.memory_space<vmem>>, %arg4: memref<1x8x32xbf16, #tpu.memory_space<vmem>>, %arg5: memref<32x32xbf16, #tpu.memory_space<vmem>>, %arg6: memref<32x32xbf16, #tpu.memory_space<vmem>>, %arg7: memref<1x32xf32, #tpu.memory_space<vmem>>, %arg8: memref<1x32xf32, #tpu.memory_space<vmem>>, %arg9: memref<1x8x32xf32, #tpu.memory_space<vmem>>, %arg10: memref<4x8x8xf32, #tpu.memory_space<vmem>>, %arg11: memref<8x32xbf16, #tpu.memory_space<vmem>>, %arg12: memref<8x32xbf16, #tpu.memory_space<vmem>>) attributes {dimension_semantics = [#tpu.dimension_semantics<parallel>, #tpu.dimension_semantics<parallel>], iteration_bounds = array<i64: 2, 1>, scalar_prefetch = 0 : i64, scratch_operands = 2 : i64, tpu.core_type = #tpu.core_type<tc>, window_params = [{transform_indices = @transform_0, window_bounds = array<i64: 1, 8, 32>}, {transform_indices = @transform_1, window_bounds = array<i64: 1, 8, 32>}, {transform_indices = @transform_2, window_bounds = array<i64: 1, 8, 32>}, {pipeline_mode = #tpu.pipeline_mode<synchronous>, transform_indices = @transform_3, window_bounds = array<i64: 32, 32>}, {pipeline_mode = #tpu.pipeline_mode<synchronous>, transform_indices = @transform_4, window_bounds = array<i64: 32, 32>}, {pipeline_mode = #tpu.pipeline_mode<synchronous>, transform_indices = @transform_5, window_bounds = array<i64: 1, 32>}, {pipeline_mode = #tpu.pipeline_mode<synchronous>, transform_indices = @transform_6, window_bounds = array<i64: 1, 32>}, {transform_indices = @transform_7, window_bounds = array<i64: 1, 8, 32>}, {transform_indices = @transform_8, window_bounds = array<i64: 4, 8, 8>}]} {
    %c0 = arith.constant 0 : index
    %c0_0 = arith.constant 0 : index
    %c0_1 = arith.constant 0 : index
    %0 = vector.load %arg2[%c0, %c0_0, %c0_1] : memref<1x8x32xbf16, #tpu.memory_space<vmem>>, vector<1x8x32xbf16>
    %1 = vector.shape_cast %0 : vector<1x8x32xbf16> to vector<8x32xbf16>
    %c0_2 = arith.constant 0 : index
    %c0_3 = arith.constant 0 : index
    %2 = vector.load %arg5[%c0_2, %c0_3] : memref<32x32xbf16, #tpu.memory_space<vmem>>, vector<32x32xbf16>
    %cst = arith.constant dense<0.000000e+00> : vector<8x32xf32>
    %3 = tpu.matmul %1, %2, %cst {dimension_numbers = #tpu.dot_dimension_numbers<[1], [0], [0], [1], [0, 0, 1, 1], [], []>} : vector<8x32xbf16>, vector<32x32xbf16>, vector<8x32xf32> -> vector<8x32xf32>
    %c0_4 = arith.constant 0 : index
    %c0_5 = arith.constant 0 : index
    %4 = vector.load %arg7[%c0_4, %c0_5] : memref<1x32xf32, #tpu.memory_space<vmem>>, vector<1x32xf32>
    %5 = vector.broadcast %4 : vector<1x32xf32> to vector<8x32xf32>
    %6 = arith.addf %3, %5 : vector<8x32xf32>
    %cst_6 = arith.constant 0.353553385 : f32
    %7 = vector.broadcast %cst_6 : f32 to vector<8x32xf32>
    %8 = arith.mulf %6, %7 : vector<8x32xf32>
    %9 = arith.truncf %8 : vector<8x32xf32> to vector<8x32xbf16>
    %c0_7 = arith.constant 0 : index
    %c0_8 = arith.constant 0 : index
    %10 = vector.load %arg11[%c0_7, %c0_8] : memref<8x32xbf16, #tpu.memory_space<vmem>>, vector<8x32xbf16>
    tpu.vector_store %arg11[%c0_7, %c0_8], %9 {strides = array<i32>} : memref<8x32xbf16, #tpu.memory_space<vmem>>, vector<8x32xbf16>,
    %c0_9 = arith.constant 0 : index
    %c0_10 = arith.constant 0 : index
    %11 = vector.load %arg11[%c0_9, %c0_10] : memref<8x32xbf16, #tpu.memory_space<vmem>>, vector<8x8xbf16>
    %c0_11 = arith.constant 0 : index
    %c0_12 = arith.constant 0 : index
    %c0_13 = arith.constant 0 : index
    %12 = vector.load %arg3[%c0_11, %c0_12, %c0_13] : memref<1x8x32xbf16, #tpu.memory_space<vmem>>, vector<1x8x8xbf16>
    %13 = vector.shape_cast %12 : vector<1x8x8xbf16> to vector<8x8xbf16>
    %c0_14 = arith.constant 0 : index
    %c0_15 = arith.constant 0 : index
    %c0_16 = arith.constant 0 : index
    %14 = vector.load %arg4[%c0_14, %c0_15, %c0_16] : memref<1x8x32xbf16, #tpu.memory_space<vmem>>, vector<1x8x8xbf16>
    %15 = vector.shape_cast %14 : vector<1x8x8xbf16> to vector<8x8xbf16>
    %cst_17 = arith.constant dense<0.000000e+00> : vector<8x8xf32>
    %16 = tpu.matmul %11, %13, %cst_17 {dimension_numbers = #tpu.dot_dimension_numbers<[1], [1], [0], [0], [0, 0, 1, 0], [], []>} : vector<8x8xbf16>, vector<8x8xbf16>, vector<8x8xf32> -> vector<8x8xf32>
    %cst_18 = arith.constant dense<0xFF800000> : vector<8xf32>
    %17 = vector.multi_reduction <maximumf>, %16, %cst_18 [1] : vector<8x8xf32> to vector<8xf32>
    %18 = vector.shape_cast %17 : vector<8xf32> to vector<8x1xf32>
    %19 = vector.broadcast %18 : vector<8x1xf32> to vector<8x8xf32>
    %20 = arith.subf %16, %19 : vector<8x8xf32>
    %21 = math.exp %20 : vector<8x8xf32>
    %cst_19 = arith.constant dense<0.000000e+00> : vector<8xf32>
    %22 = vector.multi_reduction <add>, %21, %cst_19 [1] : vector<8x8xf32> to vector<8xf32>
    %23 = vector.shape_cast %22 : vector<8xf32> to vector<8x1xf32>
    %24 = tpu.reciprocal %23 : vector<8x1xf32> -> vector<8x1xf32>
    %25 = vector.broadcast %24 : vector<8x1xf32> to vector<8x8xf32>
    %26 = arith.mulf %21, %25 : vector<8x8xf32>
    %c0_20 = arith.constant 0 : index
    %c0_21 = arith.constant 0 : index
    %c0_22 = arith.constant 0 : index
    %27 = vector.load %arg10[%c0_20, %c0_21, %c0_22] : memref<4x8x8xf32, #tpu.memory_space<vmem>>, vector<1x8x8xf32>
    %28 = vector.shape_cast %27 : vector<1x8x8xf32> to vector<8x8xf32>
    %29 = vector.shape_cast %26 : vector<8x8xf32> to vector<1x8x8xf32>
    tpu.vector_store %arg10[%c0_20, %c0_21, %c0_22], %29 {strides = array<i32>} : memref<4x8x8xf32, #tpu.memory_space<vmem>>, vector<1x8x8xf32>,
    %30 = arith.truncf %26 : vector<8x8xf32> to vector<8x8xbf16>
    %cst_23 = arith.constant dense<0.000000e+00> : vector<8x8xf32>
    %31 = tpu.matmul %30, %15, %cst_23 {dimension_numbers = #tpu.dot_dimension_numbers<[1], [0], [0], [1], [0, 0, 1, 1], [], []>} : vector<8x8xbf16>, vector<8x8xbf16>, vector<8x8xf32> -> vector<8x8xf32>
    %32 = arith.truncf %31 : vector<8x8xf32> to vector<8x8xbf16>
    %c0_24 = arith.constant 0 : index
    %c0_25 = arith.constant 0 : index
    %33 = vector.load %arg12[%c0_24, %c0_25] : memref<8x32xbf16, #tpu.memory_space<vmem>>, vector<8x8xbf16>
    tpu.vector_store %arg12[%c0_24, %c0_25], %32 {strides = array<i32>} : memref<8x32xbf16, #tpu.memory_space<vmem>>, vector<8x8xbf16>,
    %c0_26 = arith.constant 0 : index
    %c8 = arith.constant 8 : index
    %34 = vector.load %arg11[%c0_26, %c8] : memref<8x32xbf16, #tpu.memory_space<vmem>>, vector<8x8xbf16>
    %c0_27 = arith.constant 0 : index
    %c0_28 = arith.constant 0 : index
    %c8_29 = arith.constant 8 : index
    %35 = vector.load %arg3[%c0_27, %c0_28, %c8_29] : memref<1x8x32xbf16, #tpu.memory_space<vmem>>, vector<1x8x8xbf16>
    %36 = vector.shape_cast %35 : vector<1x8x8xbf16> to vector<8x8xbf16>
    %c0_30 = arith.constant 0 : index
    %c0_31 = arith.constant 0 : index
    %c8_32 = arith.constant 8 : index
    %37 = vector.load %arg4[%c0_30, %c0_31, %c8_32] : memref<1x8x32xbf16, #tpu.memory_space<vmem>>, vector<1x8x8xbf16>
    %38 = vector.shape_cast %37 : vector<1x8x8xbf16> to vector<8x8xbf16>
    %cst_33 = arith.constant dense<0.000000e+00> : vector<8x8xf32>
    %39 = tpu.matmul %34, %36, %cst_33 {dimension_numbers = #tpu.dot_dimension_numbers<[1], [1], [0], [0], [0, 0, 1, 0], [], []>} : vector<8x8xbf16>, vector<8x8xbf16>, vector<8x8xf32> -> vector<8x8xf32>
    %cst_34 = arith.constant dense<0xFF800000> : vector<8xf32>
    %40 = vector.multi_reduction <maximumf>, %39, %cst_34 [1] : vector<8x8xf32> to vector<8xf32>
    %41 = vector.shape_cast %40 : vector<8xf32> to vector<8x1xf32>
    %42 = vector.broadcast %41 : vector<8x1xf32> to vector<8x8xf32>
    %43 = arith.subf %39, %42 : vector<8x8xf32>
    %44 = math.exp %43 : vector<8x8xf32>
    %cst_35 = arith.constant dense<0.000000e+00> : vector<8xf32>
    %45 = vector.multi_reduction <add>, %44, %cst_35 [1] : vector<8x8xf32> to vector<8xf32>
    %46 = vector.shape_cast %45 : vector<8xf32> to vector<8x1xf32>
    %47 = tpu.reciprocal %46 : vector<8x1xf32> -> vector<8x1xf32>
    %48 = vector.broadcast %47 : vector<8x1xf32> to vector<8x8xf32>
    %49 = arith.mulf %44, %48 : vector<8x8xf32>
    %c1 = arith.constant 1 : index
    %c0_36 = arith.constant 0 : index
    %c0_37 = arith.constant 0 : index
    %50 = vector.load %arg10[%c1, %c0_36, %c0_37] : memref<4x8x8xf32, #tpu.memory_space<vmem>>, vector<1x8x8xf32>
    %51 = vector.shape_cast %50 : vector<1x8x8xf32> to vector<8x8xf32>
    %52 = vector.shape_cast %49 : vector<8x8xf32> to vector<1x8x8xf32>
    tpu.vector_store %arg10[%c1, %c0_36, %c0_37], %52 {strides = array<i32>} : memref<4x8x8xf32, #tpu.memory_space<vmem>>, vector<1x8x8xf32>,
    %53 = arith.truncf %49 : vector<8x8xf32> to vector<8x8xbf16>
    %cst_38 = arith.constant dense<0.000000e+00> : vector<8x8xf32>
    %54 = tpu.matmul %53, %38, %cst_38 {dimension_numbers = #tpu.dot_dimension_numbers<[1], [0], [0], [1], [0, 0, 1, 1], [], []>} : vector<8x8xbf16>, vector<8x8xbf16>, vector<8x8xf32> -> vector<8x8xf32>
    %55 = arith.truncf %54 : vector<8x8xf32> to vector<8x8xbf16>
    %c0_39 = arith.constant 0 : index
    %c8_40 = arith.constant 8 : index
    %56 = vector.load %arg12[%c0_39, %c8_40] : memref<8x32xbf16, #tpu.memory_space<vmem>>, vector<8x8xbf16>
    tpu.vector_store %arg12[%c0_39, %c8_40], %55 {strides = array<i32>} : memref<8x32xbf16, #tpu.memory_space<vmem>>, vector<8x8xbf16>,
    %c0_41 = arith.constant 0 : index
    %c16 = arith.constant 16 : index
    %57 = vector.load %arg11[%c0_41, %c16] : memref<8x32xbf16, #tpu.memory_space<vmem>>, vector<8x8xbf16>
    %c0_42 = arith.constant 0 : index
    %c0_43 = arith.constant 0 : index
    %c16_44 = arith.constant 16 : index
    %58 = vector.load %arg3[%c0_42, %c0_43, %c16_44] : memref<1x8x32xbf16, #tpu.memory_space<vmem>>, vector<1x8x8xbf16>
    %59 = vector.shape_cast %58 : vector<1x8x8xbf16> to vector<8x8xbf16>
    %c0_45 = arith.constant 0 : index
    %c0_46 = arith.constant 0 : index
    %c16_47 = arith.constant 16 : index
    %60 = vector.load %arg4[%c0_45, %c0_46, %c16_47] : memref<1x8x32xbf16, #tpu.memory_space<vmem>>, vector<1x8x8xbf16>
    %61 = vector.shape_cast %60 : vector<1x8x8xbf16> to vector<8x8xbf16>
    %cst_48 = arith.constant dense<0.000000e+00> : vector<8x8xf32>
    %62 = tpu.matmul %57, %59, %cst_48 {dimension_numbers = #tpu.dot_dimension_numbers<[1], [1], [0], [0], [0, 0, 1, 0], [], []>} : vector<8x8xbf16>, vector<8x8xbf16>, vector<8x8xf32> -> vector<8x8xf32>
    %cst_49 = arith.constant dense<0xFF800000> : vector<8xf32>
    %63 = vector.multi_reduction <maximumf>, %62, %cst_49 [1] : vector<8x8xf32> to vector<8xf32>
    %64 = vector.shape_cast %63 : vector<8xf32> to vector<8x1xf32>
    %65 = vector.broadcast %64 : vector<8x1xf32> to vector<8x8xf32>
    %66 = arith.subf %62, %65 : vector<8x8xf32>
    %67 = math.exp %66 : vector<8x8xf32>
    %cst_50 = arith.constant dense<0.000000e+00> : vector<8xf32>
    %68 = vector.multi_reduction <add>, %67, %cst_50 [1] : vector<8x8xf32> to vector<8xf32>
    %69 = vector.shape_cast %68 : vector<8xf32> to vector<8x1xf32>
    %70 = tpu.reciprocal %69 : vector<8x1xf32> -> vector<8x1xf32>
    %71 = vector.broadcast %70 : vector<8x1xf32> to vector<8x8xf32>
    %72 = arith.mulf %67, %71 : vector<8x8xf32>
    %c2 = arith.constant 2 : index
    %c0_51 = arith.constant 0 : index
    %c0_52 = arith.constant 0 : index
    %73 = vector.load %arg10[%c2, %c0_51, %c0_52] : memref<4x8x8xf32, #tpu.memory_space<vmem>>, vector<1x8x8xf32>
    %74 = vector.shape_cast %73 : vector<1x8x8xf32> to vector<8x8xf32>
    %75 = vector.shape_cast %72 : vector<8x8xf32> to vector<1x8x8xf32>
    tpu.vector_store %arg10[%c2, %c0_51, %c0_52], %75 {strides = array<i32>} : memref<4x8x8xf32, #tpu.memory_space<vmem>>, vector<1x8x8xf32>,
    %76 = arith.truncf %72 : vector<8x8xf32> to vector<8x8xbf16>
    %cst_53 = arith.constant dense<0.000000e+00> : vector<8x8xf32>
    %77 = tpu.matmul %76, %61, %cst_53 {dimension_numbers = #tpu.dot_dimension_numbers<[1], [0], [0], [1], [0, 0, 1, 1], [], []>} : vector<8x8xbf16>, vector<8x8xbf16>, vector<8x8xf32> -> vector<8x8xf32>
    %78 = arith.truncf %77 : vector<8x8xf32> to vector<8x8xbf16>
    %c0_54 = arith.constant 0 : index
    %c16_55 = arith.constant 16 : index
    %79 = vector.load %arg12[%c0_54, %c16_55] : memref<8x32xbf16, #tpu.memory_space<vmem>>, vector<8x8xbf16>
    tpu.vector_store %arg12[%c0_54, %c16_55], %78 {strides = array<i32>} : memref<8x32xbf16, #tpu.memory_space<vmem>>, vector<8x8xbf16>,
    %c0_56 = arith.constant 0 : index
    %c24 = arith.constant 24 : index
    %80 = vector.load %arg11[%c0_56, %c24] : memref<8x32xbf16, #tpu.memory_space<vmem>>, vector<8x8xbf16>
    %c0_57 = arith.constant 0 : index
    %c0_58 = arith.constant 0 : index
    %c24_59 = arith.constant 24 : index
    %81 = vector.load %arg3[%c0_57, %c0_58, %c24_59] : memref<1x8x32xbf16, #tpu.memory_space<vmem>>, vector<1x8x8xbf16>
    %82 = vector.shape_cast %81 : vector<1x8x8xbf16> to vector<8x8xbf16>
    %c0_60 = arith.constant 0 : index
    %c0_61 = arith.constant 0 : index
    %c24_62 = arith.constant 24 : index
    %83 = vector.load %arg4[%c0_60, %c0_61, %c24_62] : memref<1x8x32xbf16, #tpu.memory_space<vmem>>, vector<1x8x8xbf16>
    %84 = vector.shape_cast %83 : vector<1x8x8xbf16> to vector<8x8xbf16>
    %cst_63 = arith.constant dense<0.000000e+00> : vector<8x8xf32>
    %85 = tpu.matmul %80, %82, %cst_63 {dimension_numbers = #tpu.dot_dimension_numbers<[1], [1], [0], [0], [0, 0, 1, 0], [], []>} : vector<8x8xbf16>, vector<8x8xbf16>, vector<8x8xf32> -> vector<8x8xf32>
    %cst_64 = arith.constant dense<0xFF800000> : vector<8xf32>
    %86 = vector.multi_reduction <maximumf>, %85, %cst_64 [1] : vector<8x8xf32> to vector<8xf32>
    %87 = vector.shape_cast %86 : vector<8xf32> to vector<8x1xf32>
    %88 = vector.broadcast %87 : vector<8x1xf32> to vector<8x8xf32>
    %89 = arith.subf %85, %88 : vector<8x8xf32>
    %90 = math.exp %89 : vector<8x8xf32>
    %cst_65 = arith.constant dense<0.000000e+00> : vector<8xf32>
    %91 = vector.multi_reduction <add>, %90, %cst_65 [1] : vector<8x8xf32> to vector<8xf32>
    %92 = vector.shape_cast %91 : vector<8xf32> to vector<8x1xf32>
    %93 = tpu.reciprocal %92 : vector<8x1xf32> -> vector<8x1xf32>
    %94 = vector.broadcast %93 : vector<8x1xf32> to vector<8x8xf32>
    %95 = arith.mulf %90, %94 : vector<8x8xf32>
    %c3 = arith.constant 3 : index
    %c0_66 = arith.constant 0 : index
    %c0_67 = arith.constant 0 : index
    %96 = vector.load %arg10[%c3, %c0_66, %c0_67] : memref<4x8x8xf32, #tpu.memory_space<vmem>>, vector<1x8x8xf32>
    %97 = vector.shape_cast %96 : vector<1x8x8xf32> to vector<8x8xf32>
    %98 = vector.shape_cast %95 : vector<8x8xf32> to vector<1x8x8xf32>
    tpu.vector_store %arg10[%c3, %c0_66, %c0_67], %98 {strides = array<i32>} : memref<4x8x8xf32, #tpu.memory_space<vmem>>, vector<1x8x8xf32>,
    %99 = arith.truncf %95 : vector<8x8xf32> to vector<8x8xbf16>
    %cst_68 = arith.constant dense<0.000000e+00> : vector<8x8xf32>
    %100 = tpu.matmul %99, %84, %cst_68 {dimension_numbers = #tpu.dot_dimension_numbers<[1], [0], [0], [1], [0, 0, 1, 1], [], []>} : vector<8x8xbf16>, vector<8x8xbf16>, vector<8x8xf32> -> vector<8x8xf32>
    %101 = arith.truncf %100 : vector<8x8xf32> to vector<8x8xbf16>
    %c0_69 = arith.constant 0 : index
    %c24_70 = arith.constant 24 : index
    %102 = vector.load %arg12[%c0_69, %c24_70] : memref<8x32xbf16, #tpu.memory_space<vmem>>, vector<8x8xbf16>
    tpu.vector_store %arg12[%c0_69, %c24_70], %101 {strides = array<i32>} : memref<8x32xbf16, #tpu.memory_space<vmem>>, vector<8x8xbf16>,
    %c0_71 = arith.constant 0 : index
    %c0_72 = arith.constant 0 : index
    %103 = vector.load %arg12[%c0_71, %c0_72] : memref<8x32xbf16, #tpu.memory_space<vmem>>, vector<8x32xbf16>
    %c0_73 = arith.constant 0 : index
    %c0_74 = arith.constant 0 : index
    %104 = vector.load %arg6[%c0_73, %c0_74] : memref<32x32xbf16, #tpu.memory_space<vmem>>, vector<32x32xbf16>
    %cst_75 = arith.constant dense<0.000000e+00> : vector<8x32xf32>
    %105 = tpu.matmul %103, %104, %cst_75 {dimension_numbers = #tpu.dot_dimension_numbers<[1], [0], [0], [1], [0, 0, 1, 1], [], []>} : vector<8x32xbf16>, vector<32x32xbf16>, vector<8x32xf32> -> vector<8x32xf32>
    %c0_76 = arith.constant 0 : index
    %c0_77 = arith.constant 0 : index
    %106 = vector.load %arg8[%c0_76, %c0_77] : memref<1x32xf32, #tpu.memory_space<vmem>>, vector<1x32xf32>
    %107 = vector.broadcast %106 : vector<1x32xf32> to vector<8x32xf32>
    %108 = arith.addf %105, %107 : vector<8x32xf32>
    %c0_78 = arith.constant 0 : index
    %c0_79 = arith.constant 0 : index
    %c0_80 = arith.constant 0 : index
    %109 = vector.load %arg9[%c0_78, %c0_79, %c0_80] : memref<1x8x32xf32, #tpu.memory_space<vmem>>, vector<1x8x32xf32>
    %110 = vector.shape_cast %109 : vector<1x8x32xf32> to vector<8x32xf32>
    %111 = vector.shape_cast %108 : vector<8x32xf32> to vector<1x8x32xf32>
    tpu.vector_store %arg9[%c0_78, %c0_79, %c0_80], %111 {strides = array<i32>} : memref<1x8x32xf32, #tpu.memory_space<vmem>>, vector<1x8x32xf32>,
    return
  }
  func.func @transform_0(%arg0: i32, %arg1: i32) -> (i32, i32, i32) {
    %c0_i32 = arith.constant 0 : i32
    %c0_i32_0 = arith.constant 0 : i32
    return %arg0, %arg1, %c0_i32 : i32, i32, i32
  }
  func.func @transform_1(%arg0: i32, %arg1: i32) -> (i32, i32, i32) {
    %c0_i32 = arith.constant 0 : i32
    %c0_i32_0 = arith.constant 0 : i32
    %c0_i32_1 = arith.constant 0 : i32
    return %arg0, %c0_i32, %c0_i32_0 : i32, i32, i32
  }
  func.func @transform_2(%arg0: i32, %arg1: i32) -> (i32, i32, i32) {
    %c0_i32 = arith.constant 0 : i32
    %c0_i32_0 = arith.constant 0 : i32
    %c0_i32_1 = arith.constant 0 : i32
    return %arg0, %c0_i32, %c0_i32_0 : i32, i32, i32
  }
  func.func @transform_3(%arg0: i32, %arg1: i32) -> (i32, i32) {
    %c0_i32 = arith.constant 0 : i32
    %c0_i32_0 = arith.constant 0 : i32
    %c0_i32_1 = arith.constant 0 : i32
    return %c0_i32, %c0_i32_0 : i32, i32
  }
  func.func @transform_4(%arg0: i32, %arg1: i32) -> (i32, i32) {
    %c0_i32 = arith.constant 0 : i32
    %c0_i32_0 = arith.constant 0 : i32
    %c0_i32_1 = arith.constant 0 : i32
    return %c0_i32, %c0_i32_0 : i32, i32
  }
  func.func @transform_5(%arg0: i32, %arg1: i32) -> (i32, i32) {
    %c0_i32 = arith.constant 0 : i32
    %c0_i32_0 = arith.constant 0 : i32
    %c0_i32_1 = arith.constant 0 : i32
    return %c0_i32, %c0_i32_0 : i32, i32
  }
  func.func @transform_6(%arg0: i32, %arg1: i32) -> (i32, i32) {
    %c0_i32 = arith.constant 0 : i32
    %c0_i32_0 = arith.constant 0 : i32
    %c0_i32_1 = arith.constant 0 : i32
    return %c0_i32, %c0_i32_0 : i32, i32
  }
  func.func @transform_7(%arg0: i32, %arg1: i32) -> (i32, i32, i32) {
    %c0_i32 = arith.constant 0 : i32
    %c0_i32_0 = arith.constant 0 : i32
    return %arg0, %arg1, %c0_i32 : i32, i32, i32
  }
  func.func @transform_8(%arg0: i32, %arg1: i32) -> (i32, i32, i32) {
    %c0_i32 = arith.constant 0 : i32
    %c0_i32_0 = arith.constant 0 : i32
    return %arg0, %arg1, %c0_i32 : i32, i32, i32
  }
}

</mosaic_0001>

<bundles_post_ra>
// kernel: tpu_custom_call.1
= control target key start
LH: loop header
LB: loop body
LE: loop exit
PB: predicated region body
PF: predicated region fallthrough
CT: control target
= control target key end

     0   :  { %s1859_s0 = inlined_call_operand.hbm [shape: bf16[2,8,32], index: 0, kind: input, shape index: {}]   ;;  %s1860_s1 = inlined_call_operand.hbm [shape: bf16[2,8,32], index: 1, kind: input, shape index: {}]   ;;  %s1861_s2 = inlined_call_operand.hbm [shape: bf16[2,8,32], index: 2, kind: input, shape index: {}]   ;;  %s1862_s3 = inlined_call_operand.hbm [shape: bf16[32,32], index: 3, kind: input, shape index: {}]   ;;  %s1863_s4 = inlined_call_operand.hbm [shape: bf16[32,32], index: 4, kind: input, shape index: {}]   ;;  %s1864_s5 = inlined_call_operand.vmem [shape: f32[1,32], index: 5, kind: input, shape index: {}]   ;;  %s1865_s6 = inlined_call_operand.vmem [shape: f32[1,32], index: 6, kind: input, shape index: {}]   ;;  %s1866_s7 = inlined_call_operand.hbm [shape: f32[2,8,32], index: 7, kind: output, shape index: {0}]   ;;  %s1867_s8 = inlined_call_operand.hbm [shape: f32[8,8,8], index: 8, kind: output, shape index: {1}]  }
   0x1   :  { %1872 = sst [smem:[#allocation23_spill]] %s1860_s1 }
   0x2   :  { %1873 = sst [smem:[#allocation24_spill]] %s1862_s3 }
   0x3   :  { %1874 = sst [smem:[#allocation25_spill]] %s1865_s6 }
   0x4   :  { %14 = vsyncpa [#allocation5], 0 }
   0x5   :  { %16 = vsyncpa [#allocation5 + $0x1], 0 }
   0x6   :  { %17 = vsyncpa [#allocation8], 0 }
   0x7   :  { %18 = vsyncpa [#allocation11], 0 }
   0x8   :  { %19 = vsyncpa [#allocation6], 0 }
   0x9   :  { %21 = vsyncpa [#allocation6 + $0x1], 0 }
   0xa   :  { %22 = vsyncpa [#allocation15], 0 }
   0xb   :  { %24 = vsyncpa [#allocation15 + $0x1], 0  ;;  %s1566_s27 = smov 0   ;;  %s1568_s28 = smov 0  }
   0xc   :  { %s1570_s29 = smov 0   ;;  %s1572_s30 = smov 0  }
   0xd   :  { %s1574_s9 = smov 0   ;;  %s1576_s10 = smov 0  }
   0xe LB: > { %1875 = sst [smem:[#allocation21_spill]] %s1486_s27  ;;  %s1050_s11 = sadd.s32 4294967295, %s1506_s10   ;;  %s1506_s10 = sphi %s1576_s10, %s30_s10   ;;  %s1502_s9 = sphi %s1574_s9, %s1899_s9   ;;  %s1498_s30 = sphi %s1572_s30, %s1898_s30   ;;  %s1494_s29 = sphi %s1570_s29, %s1897_s29   ;;  %s1490_s28 = sphi %s1568_s28, %s1896_s28   ;;  %s1486_s27 = sphi %s1566_s27, %s1895_s27  }
   0xf   : > { %s1051_s12 = sadd.s32 4294967294, %s1506_s10   ;;  %p64_p0 = scmp.ne.s32.totalorder %s1490_s28, %s1486_s27 }
  0x10   : > { %p1600_p1 = scmp.eq.s32.totalorder %s1050_s11, 0  ;;  %p1604_p2 = scmp.eq.s32.totalorder %s1050_s11, 1 }
  0x11   : > { %p232_p3 = scmp.eq.s32.totalorder %s1051_s12, 1  ;;  %p1052_p5 = scmp.ge.s32.totalorder %s1506_s10, 1 }
  0x12   : > { %p1610_p4 = por %p1600_p1, %p64_p0  ;;  %p267_p7 = scmp.lt.s32.totalorder %s1506_s10, 3 }
  0x13   : > { %p1615_p6 = por %p232_p3, %p64_p0  ;;  %s1868_s17 = sshll.u32 %s1498_s30, 2 }
  0x14   : > { %p1621_p8 = pnand %p1052_p5, %p267_p7  ;;  %s1882_s1 = sld [smem:[#allocation23_spill]] }
  0x15   : > { %s1879_s16 = scalar_select %p1615_p6, 1, 0 }
  0x16   : > { %s1508_s23 = smov [#allocation7]   ;;  %p1125_p9 = pneg %p1621_p8 }
  0x17   : > { %1880 = sst [smem:[#allocation22_spill]] %s1879_s16  ;;  %s283_s24 = sshll.u32 %s1508_s23, 4  ;;  %s284_s24 = int_to_ptr.vmem [resolvable:$true] %s283_s24 }
  0x18   : > { %p1634_p10 = pnand %p1125_p9, %p1610_p4  ;;  %p1640_p11 = pnand %p1125_p9, %p1600_p1 }
  0x19   : > { %s1885_s3 = sld [smem:[#allocation24_spill]] }
  0x1a   : > { %s279_s21 = scalar_lea.hbm %s1882_s1, %s1868_s17  ;;  %p1238_p0 = pneg %p1634_p10 }
  0x1b   : > { %s281_s22 = sshll.u32 %s279_s21, 4  ;;  %s1241_s16 = scalar_lea.hbm %s1882_s1, 8  ;;  %s282_s22 = int_to_ptr.hbm [resolvable:$true] %s281_s22 }
  0x1c   : > { %s1234_s20 = sshra.s32 %s282_s22, 4  ;;  %s1235_s20 = int_to_ptr.hbm [resolvable:$true] %s1234_s20 }
  0x1d   : > { %s1236_s21 = scalar_lea.hbm %s1235_s20, 4  ;;  %p1242_p7 = scmp.lt.s32.totalorder %s1235_s20, %s1882_s1 }
  0x1e   : > { %p1237_p13 = scmp.ne.s32.totalorder %s1235_s20, %s1236_s21  ;;  %p1243_p9 = scmp.lt.s32.totalorder %s1241_s16, %s1236_s21 }
  0x1f   : > { %s306_s19 = sshll.u32 %s1885_s3, 4  ;;  %s307_s19 = int_to_ptr.hbm [resolvable:$true] %s306_s19 }
  0x20   : > { %p1239_p3 = pnand %p1238_p0, %p1237_p13  ;;  %p1244_p12 = por %p1243_p9, %p1242_p7 }
  0x22   : > { %p1240_p5 = pneg %p1239_p3 }
  0x24   : > { %p1245_p6 = pnand %p1244_p12, %p1240_p5 }
  0x26   : > { %1248 = shalt.err (!%p1245_p6)
}
  0x27   : > { %1128 = dma.hbm_to_vmem [thread:$0]  (!%p1634_p10), %s282_s22, 64, %s284_s24, [#allocation8]  }
  0x28   : > { %s1509_s11 = smov [#allocation10]   ;;  %s1871_s17 = smov 64  }
  0x29   : > { %s308_s12 = sshll.u32 %s1509_s11, 4  ;;  %s1511_s23 = smov 4   ;;  %s309_s12 = int_to_ptr.vmem [resolvable:$true] %s308_s12 }
  0x2a   : > { %1134 = dma.hbm_to_vmem [thread:$0]  (!%p1640_p11), %s307_s19, 256, %s309_s12, [#allocation11], %s1871_s17, %s1871_s17, %s1511_s23  }
  0x2b   : > { %s1886_s6 = sshll.u32 %s1498_s30, 2  ;;  %s1512_s1 = smov [#allocation9]  }
  0x2c   : > { %s293_s20 = scalar_lea.hbm %s1861_s2, %s1886_s6  ;;  %s297_s22 = sshll.u32 %s1512_s1, 4  ;;  %s298_s22 = int_to_ptr.vmem [resolvable:$true] %s297_s22 }
  0x2d   : > { %s295_s21 = sshll.u32 %s293_s20, 4  ;;  %s1301_s12 = scalar_lea.hbm %s1861_s2, 8  ;;  %s296_s21 = int_to_ptr.hbm [resolvable:$true] %s295_s21 }
  0x2e   : > { %s1294_s24 = sshra.s32 %s296_s21, 4  ;;  %s1295_s24 = int_to_ptr.hbm [resolvable:$true] %s1294_s24 }
  0x2f   : > { %s1296_s11 = scalar_lea.hbm %s1295_s24, 4  ;;  %p1302_p3 = scmp.lt.s32.totalorder %s1295_s24, %s1861_s2 }
  0x30   : > { %p1297_p6 = scmp.ne.s32.totalorder %s1295_s24, %s1296_s11  ;;  %p1303_p5 = scmp.lt.s32.totalorder %s1301_s12, %s1296_s11 }
  0x32   : > { %p1299_p12 = pnand %p1297_p6, %p1238_p0  ;;  %p1304_p7 = por %p1303_p5, %p1302_p3 }
  0x34   : > { %p1300_p13 = pneg %p1299_p12 }
  0x36   : > { %p1305_p9 = pnand %p1304_p7, %p1300_p13 }
  0x38   : > { %1308 = shalt.err (!%p1305_p9)
}
  0x39   : > { %1131 = dma.hbm_to_vmem [thread:$0]  (!%p1634_p10), %s296_s21, 64, %s298_s22, [#allocation8]  }
  0x3a   : > { %s320_s17 = sshll.u32 %s1863_s4, 4  ;;  %s1513_s6 = smov [#allocation12]   ;;  %s321_s17 = int_to_ptr.hbm [resolvable:$true] %s320_s17 }
  0x3b   : > { %s322_s16 = sshll.u32 %s1513_s6, 4  ;;  %s1887_s25 = smov 64   ;;  %s323_s16 = int_to_ptr.vmem [resolvable:$true] %s322_s16 }
  0x3c   : > { %1137 = dma.hbm_to_vmem [thread:$0]  (!%p1640_p11), %s321_s17, 256, %s323_s16, [#allocation11], %s1887_s25, %s1887_s25, %s1511_s23  }
  0x3d   : > { %s51_s20 = sadd.s32 1, %s1494_s29  ;;  %s42_s24 = sadd.s32 1, %s1502_s9 }
  0x3e   : > { %p58_p10 = scmp.ne.s32.totalorder %s1494_s29, %s1490_s28  ;;  %p44_p0 = scmp.ge.s32.totalorder %s42_s24, 2 }
  0x3f   : > { %p59_p6 = scmp.eq.s32.totalorder %s1506_s10, 0  ;;  %p1151_p13 = scmp.lt.s32.totalorder %s1506_s10, 2 }
  0x40   : > { %p1697_p12 = por %p1604_p2, %p58_p10  ;;  %s1901_s24 = smov (%p44_p0, %s42_s24), 0 }
  0x41   : > { %p1704_p3 = por %p59_p6, %p58_p10  ;;  %s342_s23 = sand.u32 1, %s1494_s29  }
  0x42   : > { %s46_s22 = ssub.s32 %s1502_s9, %s1901_s24  ;;  %s1058_s11 = sshll.u32 %s342_s23, 2 }
  0x43   : > { %p49_p11 = scmp.eq.s32.totalorder %s46_s22, 0  ;;  %s1059_s19 = sshll.u32 %s1502_s9, 2 }
  0x44   : > { %s351_s1 = scalar_lea.hbm %s1859_s0, %s1059_s19  ;;  %s346_s3 = scalar_lea.vmem [#allocation4], %s1058_s11 }
  0x45   : > { %s1713_s14 = scalar_select %p49_p11, %s1494_s29, %s51_s20  }
  0x46   : > { %s355_s17 = sshll.u32 %s346_s3, 4  ;;  %s353_s6 = sshll.u32 %s351_s1, 4  ;;  %s356_s17 = int_to_ptr.vmem [resolvable:$true] %s355_s17  ;;  %s354_s6 = int_to_ptr.hbm [resolvable:$true] %s353_s6 }
  0x47   : > { %p1139_p2 = pnand %p1151_p13, %p1704_p3  ;;  %s343_s16 = scalar_lea.sflag [#allocation5], %s342_s23 }
  0x48   : > { %364 = sbr.rel (%p1621_p8) target bundleno = 1182 (0x49e), region = 48  ;;  %s1725_s25 = sand.u32 (!%p1621_p8), 1, %s1490_s28  }
  0x49   : > { %1141 = dma.hbm_to_vmem [thread:$0]  (!%p1139_p2), %s354_s6, 64, %s356_s17, %s343_s16  }
  0x4a   : > { %s1061_s20 = sshll.u32 (!%p1621_p8), %s1725_s25, 2  ;;  %s367_s22 = scalar_lea.sflag (!%p1621_p8), [#allocation5], %s1725_s25 }
  0x4b   : > { %s370_s11 = scalar_lea.vmem (!%p1621_p8), [#allocation4], %s1061_s20 }
  0x4d   : > { %1465 = dma.done.wait (%p1610_p4), %s367_s22, 64  }
  0x4e   : > { %1467 = vsyncadd (%p1610_p4), %s367_s22, 4294967232 }
  0x4f   : > { %1469 = dma.done.wait (%p1610_p4), [#allocation8], 128  }
  0x50   : > { %1471 = vsyncadd (%p1610_p4), [#allocation8], 4294967168 }
  0x51   : > { %1473 = dma.done.wait (%p1600_p1), [#allocation11], 512  }
  0x52   : > { %1475 = vsyncadd (%p1600_p1), [#allocation11], 4294966784  ;;  %v1103_v0 = vld [vmem:[#allocation10 + $0x8] sm:$0xff]  ;;  %v1102_v1 = vld [vmem:[#allocation10] sm:$0xff]  ;;  %vm452_vm0 = vcmask 261120   ;;  %vm476_vm1 = vcmask 64512  }
  0x53   : > { %462 = vmatpush.bf16.msra.mxu0 %v1103_v0  ;;  %v431_v2 = vld [vmem:[%s370_s11] sm:$0xf]  ;;  %v474_v3 = vld [vmem:[#allocation7] sm:$0xf]  ;;  %s1514_s13 = smov 104   ;;  %s1515_s15 = smov 112  }
  0x54   : > { %v726_v4 = vld [vmem:[#allocation7] sm:$0xf]  ;;  %v481_v5 = vsel %vm476_vm1, %v474_v3, 0  ;;  %s1516_s18 = smov 120   ;;  %v1216_v14 = vld [vmem:[%s1864_s5] ss:$0 sm:$0xff] }
  0x55   : > { %v734_v6 = vunpack.c.l.b16 %v726_v4  ;;  %v636_v7 = vld [vmem:[#allocation7] sm:$0xf]  ;;  %490 = vmatpush.bf16.xpose.msra.mxu1 %v481_v5  ;;  %vm471_vm2 = vcmask 257024   ;;  %v475_v56 = vld [vmem:[#allocation9] sm:$0xf]  ;;  %vm525_vm3 = vcmask 1043456  }
  0x56   : > { %v546_v8 = vld [vmem:[#allocation7] sm:$0xf]  ;;  %v644_v9 = vunpack.c.l.b16 %v636_v7  ;;  %v527_v57 = vsel %vm525_vm3, %v475_v56, 0  ;;  %v547_v63 = vld [vmem:[#allocation9] sm:$0xf]  ;;  %s1065_s19 = sshll.u32 %s1725_s25, 5 }
  0x57   : > { %463 = vmatpush.bf16.msra.mxu0 %v1102_v1  ;;  %v554_v10 = vunpack.c.l.b16 %v546_v8  ;;  %v735_v11 = vpack.c.b16 %v734_v6, %v734_v6  ;;  %536 = vmatpush.bf16.msra.mxu2 %v527_v57  ;;  %s1767_s12 = scalar_lea.vmem [#allocation14], %s1065_s19  ;;  %vm543_vm8 = vcmask 60416   ;;  %s1517_s27 = smov 8  }
  0x58   : > { %v645_v12 = vpack.c.b16 %v644_v9, %v644_v9  ;;  %s1518_s1 = smov 16   ;;  %s1519_s3 = smov 24  }
  0x59   : > { %v555_v13 = vpack.c.b16 %v554_v10, %v554_v10  ;;  %736 = vrot.lane.b32.xlu1 %v735_v11, %s1514_s13  ;;  %s1106_s17 = sshll.u32 %s1498_s30, 5  ;;  %s887_s22 = sshll.u32 %s1767_s12, 4  ;;  %s888_s22 = int_to_ptr.vmem [resolvable:$true] %s887_s22 }
  0x5a   : > { %1074 = vmatmul.msk.bf16.vlgmr.msra.gmra.mxu0 %vm452_vm0, %v431_v2  ;;  %646 = vrot.lane.b32.xlu2 %v645_v12, %s1515_s15  ;;  %v605_v2 = vunpack.c.l.b16 %v547_v63  ;;  %s886_s20 = scalar_lea.hbm %s1867_s8, %s1106_s17  ;;  %s1404_s19 = scalar_lea.hbm %s1867_s8, 64 }
  0x5b   : > { %556 = vrot.lane.b32.xlu0 %v555_v13, %s1516_s18  ;;  %s889_s11 = sshll.u32 %s886_s20, 4  ;;  %s890_s11 = int_to_ptr.hbm [resolvable:$true] %s889_s11 }
  0x5c   : > { %v606_v5 = vpack.c.b16 %v605_v2, %v605_v2 }
  0xb4   : > { %v647_v30 = vpop.permute.xlu2 %646 }
  0xb5   : > { %v652_v31 = vsel %vm476_vm1, %v647_v30, 0 }
  0xb6   : > { %661 = vmatpush.bf16.xpose.msrb.mxu0 %v652_v31 }
  0xcb   : > { %v737_v34 = vpop.permute.xlu1 %736 }
  0xcc   : > { %v742_v35 = vsel %vm476_vm1, %v737_v34, 0 }
  0xcd   : > { %v557_v32 = vpop.permute.xlu0 %556 }
  0xce   : > { %v562_v33 = vsel %vm476_vm1, %v557_v32, 0 }
  0xcf   : > { %571 = vmatpush.bf16.xpose.msra.mxu3 %v562_v33 }
  0xd7   : > { %v465_v15 = vpop.f32.mrf.mxu0  ;;  %751 = vmatpush.bf16.xpose.msrb.mxu3 %v742_v35 }
  0xd8   : > { %v466_v16 = vadd.f32 %v1216_v14, %v465_v15 }
  0xda   : > { %v469_v17 = vmul.f32 0.35355338, %v466_v16 }
  0xdc   : > { %v470_v18 = vpack.c.bf16 %v469_v17, %v469_v17 }
  0xde   : > { %472 = vst.msk [vmem:[#allocation2] sm:$0xf] %vm471_vm2, %v470_v18 }
  0xdf   : > { %v467_v19 = vpop.f32.mrf.mxu0 }
  0xe5   : > { %v473_v20 = vld [vmem:[#allocation2] sm:$0xf] }
  0xe6   : > { %v725_v21 = vld [vmem:[#allocation2] sm:$0xf]  ;;  %1075 = vmatmul.msk.bf16.vlgmr.msra.gmra.mxu1 %vm476_vm1, %v473_v20 }
  0xe7   : > { %v635_v22 = vld [vmem:[#allocation2] sm:$0xf]  ;;  %v729_v23 = vunpack.c.l.b16 %v725_v21 }
  0xe8   : > { %v639_v24 = vunpack.c.l.b16 %v635_v22  ;;  %v545_v25 = vld [vmem:[#allocation2] sm:$0xf] }
  0xe9   : > { %v549_v26 = vunpack.c.l.b16 %v545_v25  ;;  %v730_v27 = vpack.c.b16 %v729_v23, %v729_v23 }
  0xea   : > { %v640_v28 = vpack.c.b16 %v639_v24, %v639_v24  ;;  %v727_v24 = vld [vmem:[#allocation9] sm:$0xf] }
  0xeb   : > { %v550_v29 = vpack.c.b16 %v549_v26, %v549_v26  ;;  %731 = vrot.lane.b32.xlu1 %v730_v27, %s1514_s13  ;;  %v785_v26 = vunpack.c.l.b16 %v727_v24  ;;  %v1105_v24 = vld [vmem:[#allocation12 + $0x8] sm:$0xff] }
  0xec   : > { %641 = vrot.lane.b32.xlu2 %v640_v28, %s1515_s15  ;;  %v637_v28 = vld [vmem:[#allocation9] sm:$0xf]  ;;  %845 = vmatpush.bf16.msra.mxu0 %v1105_v24 }
  0xed   : > { %551 = vrot.lane.b32.xlu0 %v550_v29, %s1516_s18  ;;  %v786_v27 = vpack.c.b16 %v785_v26, %v785_v26  ;;  %v695_v29 = vunpack.c.l.b16 %v637_v28 }
  0xef   : > { %v696_v30 = vpack.c.b16 %v695_v29, %v695_v29 }
 0x146   : > { %v642_v36 = vpop.permute.xlu2 %641 }
 0x147   : > { %1080 = vmatmul.msk.bf16.vlgmr.msrb.gmra.mxu0 %vm476_vm1, %v642_v36 }
 0x15d   : > { %v732_v41 = vpop.permute.xlu1 %731 }
 0x15f   : > { %v552_v37 = vpop.permute.xlu0 %551 }
 0x160   : > { %1077 = vmatmul.msk.bf16.vlgmr.msra.gmra.mxu3 %vm476_vm1, %v552_v37 }
 0x163   : > { %v492_v38 = vpop.f32.mrf.mxu1 }
 0x164   : > { %v496_v39 = vsel %vm476_vm1, %v492_v38, -inf }
 0x165   : > { %497 = vmax.xlane.f32.xlu0 %v496_v39 }
 0x16b   : > { %v494_v40 = vpop.f32.mrf.mxu1 }
 0x170   : > { %1083 = vmatmul.msk.bf16.vlgmr.msrb.gmra.mxu3 %vm476_vm1, %v732_v41 }
 0x1c4   : > { %v663_v42 = vpop.f32.mrf.mxu0 }
 0x1c5   : > { %v667_v55 = vsel %vm476_vm1, %v663_v42, -inf }
 0x1cc   : > { %v665_v43 = vpop.f32.mrf.mxu0 }
 0x1d8   : > { %v498_v44 = vpop.xlane.xlu0 %497 }
 0x1d9   : > { %v499_v45 = vsub.f32 %v492_v38, %v498_v44 }
 0x1db   : > { %v500_v46 = vmul.f32 1.442695, %v499_v45 }
 0x1dd   : > { %1218 = vpow2.f32 %v500_v46 }
 0x1e3   : > { %v573_v47 = vpop.f32.mrf.mxu3  ;;  %v1219_v49 = vpop.eup %1218 }
 0x1e4   : > { %v577_v48 = vsel %vm476_vm1, %v573_v47, -inf  ;;  %v502_v50 = vsel %vm476_vm1, %v1219_v49, 0.0 }
 0x1e5   : > { %578 = vmax.xlane.f32.xlu1 %v577_v48  ;;  %503 = vadd.xlane.f32.xlu0 %v502_v50 }
 0x1eb   : > { %v575_v51 = vpop.f32.mrf.mxu3 }
 0x1f3   : > { %v753_v52 = vpop.f32.mrf.mxu3 }
 0x1f4   : > { %v757_v53 = vsel %vm476_vm1, %v753_v52, -inf }
 0x1f5   : > { %758 = vmax.xlane.f32.xlu2 %v757_v53 }
 0x1f9   : > { %607 = vrot.lane.b32.xlu0 %v606_v5, %s1516_s18 }
 0x1fb   : > { %v755_v54 = vpop.f32.mrf.mxu3 }
 0x1fd   : > { %668 = vmax.xlane.f32.xlu2 %v667_v55 }
 0x258   : > { %v504_v58 = vpop.xlane.xlu0 %503  ;;  %v579_v13 = vpop.xlane.xlu1 %578 }
 0x259   : > { %1220 = vrcp.f32 %v504_v58  ;;  %v516_v62 = vand.u32 2147483648, %v504_v58  ;;  %v514_v1 = vand.u32 2147483647, %v504_v58  ;;  %vm510_vm5 = vweird.f32 %v504_v58 }
 0x25a   : > { %v580_v17 = vsub.f32 %v573_v47, %v579_v13 }
 0x25b   : > { %v517_v6 = vor.u32 1.1754944e-38, %v516_v62  ;;  %vm515_vm7 = vcmp.eq.f32.partialorder %v514_v1, 8.507059e+37 }
 0x25c   : > { %v581_v20 = vmul.f32 1.442695, %v580_v17 }
 0x25f   : > { %v1221_v59 = vpop.eup %1220 }
 0x260   : > { %v506_v60 = vmul.f32 %v1221_v59, %v504_v58  ;;  %vm511_vm4 = vweird.f32 %v1221_v59 }
 0x261   : > { %vm512_vm6 = vmor %vm510_vm5, %vm511_vm4 }
 0x262   : > { %v507_v61 = vsub.f32 1.0, %v506_v60 }
 0x264   : > { %v508_v0 = vmul.f32 %v1221_v59, %v507_v61 }
 0x266   : > { %v509_v3 = vadd.f32 %v1221_v59, %v508_v0 }
 0x268   : > { %v759_v4 = vpop.xlane.xlu2 %758  ;;  %v513_v8 = vsel %vm512_vm6, %v1221_v59, %v509_v3 }
 0x269   : > { %v760_v7 = vsub.f32 %v753_v52, %v759_v4  ;;  %v518_v10 = vsel %vm515_vm7, %v517_v6, %v513_v8 }
 0x26a   : > { %v519_v11 = vmul.f32 %v1219_v49, %v518_v10 }
 0x26b   : > { %v761_v9 = vmul.f32 1.442695, %v760_v7  ;;  %v608_v32 = vpop.permute.xlu0 %607 }
 0x26c   : > { %520 = vst.msk [vmem:[%s1767_s12] sm:$0xff] %vm476_vm1, %v519_v11  ;;  %v521_v12 = vpack.c.bf16 %v519_v11, %v519_v11  ;;  %v613_v33 = vsel %vm525_vm3, %v608_v32, 0 }
 0x26d   : > { %1222 = vpow2.f32 %v761_v9  ;;  %622 = vmatpush.bf16.msrb.mxu2 %v613_v33 }
 0x26e   : > { %1076 = vmatmul.msk.bf16.vlgmr.msra.gmra.mxu2 %vm476_vm1, %v521_v12 }
 0x270   : > { %v669_v14 = vpop.xlane.xlu2 %668 }
 0x271   : > { %v670_v15 = vsub.f32 %v663_v42, %v669_v14 }
 0x273   : > { %v1223_v16 = vpop.eup %1222  ;;  %v671_v18 = vmul.f32 1.442695, %v670_v15 }
 0x274   : > { %v763_v19 = vsel %vm476_vm1, %v1223_v16, 0.0 }
 0x275   : > { %1224 = vpow2.f32 %v671_v18  ;;  %764 = vadd.xlane.f32.xlu2 %v763_v19 }
 0x276   : > { %1226 = vpow2.f32 %v581_v20 }
 0x27b   : > { %v1773_v21 = vpop.eup %1224 }
 0x27c   : > { %v673_v22 = vsel %vm476_vm1, %v1773_v21, 0.0  ;;  %v1777_v23 = vpop.eup %1226 }
 0x27d   : > { %674 = vadd.xlane.f32.xlu1 %v673_v22  ;;  %v583_v25 = vsel %vm476_vm1, %v1777_v23, 0.0 }
 0x285   : > { %584 = vadd.xlane.f32.xlu1 %v583_v25  ;;  %v1104_v25 = vld [vmem:[#allocation12] sm:$0xff] }
 0x286   : > { %846 = vmatpush.bf16.msra.mxu0 %v1104_v25 }
 0x28d   : > { %787 = vrot.lane.b32.xlu2 %v786_v27, %s1514_s13  ;;  %s859_s13 = scalar_lea.sflag [#allocation15], %s1725_s25 }
 0x29e   : > { %697 = vrot.lane.b32.xlu1 %v696_v30, %s1515_s15  ;;  %s1398_s15 = sshra.s32 %s890_s11, 4  ;;  %s1399_s15 = int_to_ptr.hbm [resolvable:$true] %s1398_s15 }
 0x29f   : > { %s1400_s18 = scalar_lea.hbm %s1399_s15, 32  ;;  %p1405_p5 = scmp.lt.s32.totalorder %s1399_s15, %s1867_s8 }
 0x2a0   : > { %p1401_p1 = scmp.ne.s32.totalorder %s1399_s15, %s1400_s18  ;;  %p1406_p7 = scmp.lt.s32.totalorder %s1404_s19, %s1400_s18 }
 0x2a2   : > { %p1402_p4 = pnand %p1401_p1, %p1697_p12  ;;  %p1407_p9 = por %p1406_p7, %p1405_p5 }
 0x2a4   : > { %p1403_p8 = pneg %p1402_p4 }
 0x2a6   : > { %p1408_p10 = pnand %p1407_p9, %p1403_p8 }
 0x2e8   : > { %v765_v31 = vpop.xlane.xlu2 %764 }
 0x2e9   : > { %1228 = vrcp.f32 %v765_v31  ;;  %v777_v38 = vand.u32 2147483648, %v765_v31  ;;  %v775_v41 = vand.u32 2147483647, %v765_v31  ;;  %vm771_vm10 = vweird.f32 %v765_v31 }
 0x2eb   : > { %v778_v47 = vor.u32 1.1754944e-38, %v777_v38  ;;  %vm776_vm12 = vcmp.eq.f32.partialorder %v775_v41, 8.507059e+37 }
 0x2ef   : > { %v1229_v34 = vpop.eup %1228 }
 0x2f0   : > { %v767_v35 = vmul.f32 %v1229_v34, %v765_v31  ;;  %v675_v36 = vpop.xlane.xlu1 %674  ;;  %vm772_vm9 = vweird.f32 %v1229_v34  ;;  %v788_v43 = vpop.permute.xlu2 %787 }
 0x2f1   : > { %1230 = vrcp.f32 %v675_v36  ;;  %v538_v39 = vpop.f32.mrf.mxu2  ;;  %v793_v45 = vsel %vm525_vm3, %v788_v43, 0  ;;  %vm773_vm11 = vmor %vm771_vm10, %vm772_vm9  ;;  %v687_v54 = vand.u32 2147483648, %v675_v36  ;;  %v685_v57 = vand.u32 2147483647, %v675_v36 }
 0x2f2   : > { %v768_v37 = vsub.f32 1.0, %v767_v35  ;;  %v542_v42 = vpack.c.bf16 %v538_v39, %v538_v39  ;;  %802 = vmatpush.bf16.msra.mxu2 %v793_v45  ;;  %vm681_vm14 = vweird.f32 %v675_v36 }
 0x2f3   : > { %v688_v60 = vor.u32 1.1754944e-38, %v687_v54  ;;  %vm686_vm2 = vcmp.eq.f32.partialorder %v685_v57, 8.507059e+37 }
 0x2f4   : > { %v769_v40 = vmul.f32 %v1229_v34, %v768_v37  ;;  %544 = vst.msk [vmem:[#allocation3] sm:$0xf] %vm543_vm8, %v542_v42  ;;  %vm813_vm8 = vcmask 257216  }
 0x2f6   : > { %v770_v44 = vadd.f32 %v1229_v34, %v769_v40 }
 0x2f7   : > { %v1231_v46 = vpop.eup %1230 }
 0x2f8   : > { %v774_v48 = vsel %vm773_vm11, %v1229_v34, %v770_v44  ;;  %v677_v49 = vmul.f32 %v1231_v46, %v675_v36  ;;  %v585_v50 = vpop.xlane.xlu1 %584  ;;  %vm682_vm13 = vweird.f32 %v1231_v46 }
 0x2f9   : > { %v779_v51 = vsel %vm776_vm12, %v778_v47, %v774_v48  ;;  %1232 = vrcp.f32 %v585_v50  ;;  %v540_v55 = vpop.f32.mrf.mxu2  ;;  %vm683_vm15 = vmor %vm681_vm14, %vm682_vm13  ;;  %v597_v2 = vand.u32 2147483648, %v585_v50  ;;  %v595_v4 = vand.u32 2147483647, %v585_v50 }
 0x2fa   : > { %v780_v52 = vmul.f32 %v1223_v16, %v779_v51  ;;  %v678_v53 = vsub.f32 1.0, %v677_v49  ;;  %vm591_vm5 = vweird.f32 %v585_v50 }
 0x2fb   : > { %v598_v6 = vor.u32 1.1754944e-38, %v597_v2  ;;  %vm596_vm7 = vcmp.eq.f32.partialorder %v595_v4, 8.507059e+37 }
 0x2fc   : > { %1084 = vst.msk [vmem:[%s1767_s12 + $0x18] sm:$0xff] %vm476_vm1, %v780_v52  ;;  %v679_v56 = vmul.f32 %v1231_v46, %v678_v53  ;;  %v783_v14 = vpack.c.bf16 %v780_v52, %v780_v52 }
 0x2fe   : > { %v680_v58 = vadd.f32 %v1231_v46, %v679_v56 }
 0x2ff   : > { %v1233_v59 = vpop.eup %1232 }
 0x300   : > { %v684_v61 = vsel %vm683_vm15, %v1231_v46, %v680_v58  ;;  %v587_v62 = vmul.f32 %v1233_v59, %v585_v50  ;;  %vm592_vm4 = vweird.f32 %v1233_v59 }
 0x301   : > { %v689_v63 = vsel %vm686_vm2, %v688_v60, %v684_v61  ;;  %vm593_vm6 = vmor %vm591_vm5, %vm592_vm4 }
 0x302   : > { %v588_v0 = vsub.f32 1.0, %v587_v62  ;;  %v690_v1 = vmul.f32 %v1773_v21, %v689_v63 }
 0x304   : > { %v589_v3 = vmul.f32 %v1233_v59, %v588_v0  ;;  %1081 = vst.msk [vmem:[%s1767_s12 + $0x10] sm:$0xff] %vm476_vm1, %v690_v1  ;;  %v693_v13 = vpack.c.bf16 %v690_v1, %v690_v1 }
 0x306   : > { %v590_v5 = vadd.f32 %v1233_v59, %v589_v3 }
 0x308   : > { %v594_v7 = vsel %vm593_vm6, %v1233_v59, %v590_v5 }
 0x309   : > { %v599_v8 = vsel %vm596_vm7, %v598_v6, %v594_v7 }
 0x30a   : > { %v600_v9 = vmul.f32 %v1777_v23, %v599_v8 }
 0x30c   : > { %1078 = vst.msk [vmem:[%s1767_s12 + $0x8] sm:$0xff] %vm476_vm1, %v600_v9  ;;  %v603_v10 = vpack.c.bf16 %v600_v9, %v600_v9 }
 0x30e   : > { %1079 = vmatmul.msk.bf16.vlgmr.msrb.gmra.mxu2 %vm476_vm1, %v603_v10 }
 0x310   : > { %v698_v11 = vpop.permute.xlu1 %697 }
 0x311   : > { %v703_v12 = vsel %vm525_vm3, %v698_v11, 0  ;;  %vm723_vm3 = vcmask 191616  }
 0x312   : > { %712 = vmatpush.bf16.msrb.mxu1 %v703_v12 }
 0x315   : > { %1082 = vmatmul.msk.bf16.vlgmr.msrb.gmra.mxu1 %vm476_vm1, %v693_v13 }
 0x31e   : > { %1085 = vmatmul.msk.bf16.vlgmr.msra.gmra.mxu2 %vm476_vm1, %v783_v14  ;;  %vm633_vm1 = vcmask 126016  }
 0x391   : > { %v624_v15 = vpop.f32.mrf.mxu2 }
 0x392   : > { %v628_v16 = vpack.c.bf16 %v624_v15, %v624_v15  ;;  %v714_v17 = vpop.f32.mrf.mxu1 }
 0x393   : > { %v718_v19 = vpack.c.bf16 %v714_v17, %v714_v17 }
 0x394   : > { %630 = vrot.lane.b32.xlu0 %v628_v16, %s1517_s27 }
 0x399   : > { %v626_v18 = vpop.f32.mrf.mxu2 }
 0x39a   : > { %v716_v20 = vpop.f32.mrf.mxu1 }
 0x39c   : > { %720 = vrot.lane.b32.xlu0 %v718_v19, %s1518_s1 }
 0x3a1   : > { %v804_v21 = vpop.f32.mrf.mxu2 }
 0x3a2   : > { %v808_v22 = vpack.c.bf16 %v804_v21, %v804_v21 }
 0x3a4   : > { %810 = vrot.lane.b32.xlu2 %v808_v22, %s1519_s3 }
 0x3a9   : > { %v806_v23 = vpop.f32.mrf.mxu2 }
 0x3fe   : > { %v811_v28 = vpop.permute.xlu2 %810 }
 0x406   : > { %v631_v26 = vpop.permute.xlu0 %630 }
 0x407   : > { %634 = vst.msk [vmem:[#allocation3] sm:$0xf] %vm633_vm1, %v631_v26 }
 0x40e   : > { %v721_v27 = vpop.permute.xlu0 %720 }
 0x40f   : > { %724 = vst.msk [vmem:[#allocation3] sm:$0xf] %vm723_vm3, %v721_v27 }
 0x410   : > { %814 = vst.msk [vmem:[#allocation3] sm:$0xf] %vm813_vm8, %v811_v28 }
 0x417   : > { %v815_v29 = vld [vmem:[#allocation3] sm:$0xf] }
 0x418   : > { %1094 = vmatmul.msk.bf16.vlgmr.msra.gmra.mxu0 %vm452_vm0, %v815_v29 }
 0x419   : > { %1411 = shalt.err (!%p1408_p10)
}
 0x41a   : > { %s1520_s12 = smov 128   ;;  %s1097_s17 = sshll.u32 %s1498_s30, 3 }
 0x41b   : > { %1122 = dma.vmem_to_hbm [thread:$0]  (%p1697_p12), %s888_s22, 512, %s890_s11, %s859_s13, %s1520_s12, %s1520_s12, %s1517_s27  }
 0x41c   : > { %s1064_s6 = sshll.u32 %s1725_s25, 3  ;;  %s870_s26 = scalar_lea.hbm %s1866_s7, %s1097_s17 }
 0x41d   : > { %s1890_s23 = sld [smem:[#allocation25_spill]]  ;;  %s421_s19 = scalar_lea.vmem [#allocation13], %s1064_s6 }
 0x41e   : > { %s872_s1 = sshll.u32 %s421_s19, 4  ;;  %s874_s3 = sshll.u32 %s870_s26, 4  ;;  %s873_s1 = int_to_ptr.vmem [resolvable:$true] %s872_s1  ;;  %s875_s3 = int_to_ptr.hbm [resolvable:$true] %s874_s3 }
 0x41f   : > { %s854_s30 = scalar_lea.sflag [#allocation6], %s1725_s25  ;;  %s1426_s27 = sshra.s32 %s875_s3, 4  ;;  %s1427_s27 = int_to_ptr.hbm [resolvable:$true] %s1426_s27 }
 0x420   : > { %s1428_s22 = scalar_lea.hbm %s1427_s27, 8  ;;  %s1432_s12 = scalar_lea.hbm %s1866_s7, 16 }
 0x421   : > { %p1429_p0 = scmp.ne.s32.totalorder %s1427_s27, %s1428_s22  ;;  %p1433_p3 = scmp.lt.s32.totalorder %s1427_s27, %s1866_s7 }
 0x422   : > { %p1434_p11 = scmp.lt.s32.totalorder %s1432_s12, %s1428_s22 }
 0x423   : > { %v1217_v30 = vld [vmem:[%s1890_s23] ss:$0 sm:$0xff]  ;;  %p1430_p6 = pnand %p1429_p0, %p1697_p12 }
 0x424   : > { %p1435_p2 = por %p1434_p11, %p1433_p3 }
 0x425   : > { %p1431_p13 = pneg %p1430_p6 }
 0x427   : > { %p1436_p1 = pnand %p1435_p2, %p1431_p13 }
 0x495   : > { %v848_v31 = vpop.f32.mrf.mxu0 }
 0x496   : > { %v849_v32 = vadd.f32 %v1217_v30, %v848_v31 }
 0x498   : > { %852 = vst.msk [vmem:[%s421_s19] sm:$0xff] %vm452_vm0, %v849_v32 }
 0x499   : > { %1439 = shalt.err (!%p1436_p1)
}
 0x49a   : > { %1121 = dma.vmem_to_hbm [thread:$0]  (%p1697_p12), %s873_s1, 128, %s875_s3, %s854_s30  }
 0x49d   : > { %v850_v33 = vpop.f32.mrf.mxu0 }
 0x49e PF: > { %s1891_s25 = sld [smem:[#allocation21_spill]]  ;;  %p1894_p8 = scmp.ge.s32.totalorder %s1506_s10, 2 }
 0x49f   : > { %s1892_s16 = sld [smem:[#allocation22_spill]] }
 0x4a4   : > { %s904_s20 = sand.u32 1, %s1891_s25  }
 0x4a5   : > { %p1893_p4 = scmp.ne.s32.totalorder %s1892_s16, 0  ;;  %s905_s26 = scalar_lea.sflag [#allocation6], %s904_s20 }
 0x4a7   : > { %p1143_p5 = pnand %p1894_p8, %p1893_p4 }
 0x4a9   : > { %p1144_p7 = pneg %p1143_p5 }
 0x4ab   : > { %1477 = dma.done.wait (%p1144_p7), %s905_s26, 128  }
 0x4ac   : > { %1479 = vsyncadd (%p1144_p7), %s905_s26, 4294967168  ;;  %s915_s15 = scalar_lea.sflag [#allocation15], %s904_s20 }
 0x4ad   : > { %1481 = dma.done.wait (%p1144_p7), %s915_s15, 512  }
 0x4ae   : > { %1483 = vsyncadd (%p1144_p7), %s915_s15, 4294966784  ;;  %s30_s10 = sadd.s32 1, %s1506_s10   ;;  %s1895_s27 = smov %s1490_s28 }
 0x4af   : > { %p27_p9 = scmp.ge.s32.totalorder %s30_s10, 4   ;;  %s1896_s28 = smov %s1494_s29 }
 0x4b0   : > { %s1897_s29 = smov %s1713_s14  ;;  %s1898_s30 = smov %s1502_s9 }
 0x4b1   : > { %s1899_s9 = smov %s1901_s24  ;;  %29 = sbr.rel (!%p27_p9) target bundleno = 14 (0xe), region = 131 }
 0x4b6   :  { %921 = vsyncpa [#allocation5], 1 }
 0x4b7   :  { %923 = vsyncpa [#allocation5 + $0x1], 1 }
 0x4b8   :  { %924 = vsyncpa [#allocation8], 1 }
 0x4b9   :  { %925 = vsyncpa [#allocation11], 1 }
 0x4ba   :  { %926 = vsyncpa [#allocation6], 1 }
 0x4bb   :  { %928 = vsyncpa [#allocation6 + $0x1], 1 }
 0x4bc   :  { %929 = vsyncpa [#allocation15], 1 }
 0x4bd   :  { %931 = vsyncpa [#allocation15 + $0x1], 1 }

// kernel: tpu_custom_call.1
= control target key start
LH: loop header
LB: loop body
LE: loop exit
PB: predicated region body
PF: predicated region fallthrough
CT: control target
= control target key end

     0   :  { %s1891_s0 = inlined_call_operand.hbm [shape: bf16[2,8,32], index: 0, kind: input, shape index: {}]   ;;  %s1892_s1 = inlined_call_operand.hbm [shape: bf16[2,8,32], index: 1, kind: input, shape index: {}]   ;;  %s1893_s2 = inlined_call_operand.hbm [shape: bf16[2,8,32], index: 2, kind: input, shape index: {}]   ;;  %s1894_s3 = inlined_call_operand.hbm [shape: bf16[32,32], index: 3, kind: input, shape index: {}]   ;;  %s1895_s4 = inlined_call_operand.hbm [shape: bf16[32,32], index: 4, kind: input, shape index: {}]   ;;  %s1896_s5 = inlined_call_operand.vmem [shape: f32[1,32], index: 5, kind: input, shape index: {}]   ;;  %s1897_s6 = inlined_call_operand.vmem [shape: f32[1,32], index: 6, kind: input, shape index: {}]   ;;  %s1898_s7 = inlined_call_operand.hbm [shape: f32[2,8,32], index: 7, kind: output, shape index: {0}]   ;;  %s1899_s8 = inlined_call_operand.hbm [shape: f32[8,8,8], index: 8, kind: output, shape index: {1}]  }
   0x1   :  { %1911 = sst [smem:[#allocation28_spill]] %s1892_s1 }
   0x2   :  { %1912 = sst [smem:[#allocation29_spill]] %s1894_s3 }
   0x3   :  { %1913 = sst [smem:[#allocation30_spill]] %s1895_s4 }
   0x4   :  { %1914 = sst [smem:[#allocation31_spill]] %s1897_s6 }
   0x5   :  { %1915 = sst [smem:[#allocation32_spill]] %s1898_s7 }
   0x6   :  { %1916 = sst [smem:[#allocation33_spill]] %s1899_s8 }
   0x7   :  { %14 = vsyncpa [#allocation5], 0 }
   0x8   :  { %16 = vsyncpa [#allocation5 + $0x1], 0 }
   0x9   :  { %17 = vsyncpa [#allocation8], 0 }
   0xa   :  { %19 = vsyncpa [#allocation8 + $0x1], 0 }
   0xb   :  { %20 = vsyncpa [#allocation11], 0 }
   0xc   :  { %21 = vsyncpa [#allocation6], 0 }
   0xd   :  { %23 = vsyncpa [#allocation6 + $0x1], 0 }
   0xe   :  { %24 = vsyncpa [#allocation15], 0 }
   0xf   :  { %26 = vsyncpa [#allocation15 + $0x1], 0  ;;  %s1618_s27 = smov 0   ;;  %s1620_s28 = smov 0  }
  0x10   :  { %s1622_s29 = smov 0   ;;  %s1624_s30 = smov 0  }
  0x11   :  { %s1626_s9 = smov 0   ;;  %s1628_s10 = smov 0  }
  0x12 LB: > { %1917 = sst [smem:[#allocation21_spill]] %s1540_s27  ;;  %s1649_s11 = sadd.s32 4294967295, %s1560_s10   ;;  %s1560_s10 = sphi %s1628_s10, %s32_s10   ;;  %s1556_s9 = sphi %s1626_s9, %s1946_s9   ;;  %s1552_s30 = sphi %s1624_s30, %s1945_s30   ;;  %s1548_s29 = sphi %s1622_s29, %s1944_s29   ;;  %s1544_s28 = sphi %s1620_s28, %s1948_s28   ;;  %s1540_s27 = sphi %s1618_s27, %s1947_s27  }
  0x13   : > { %1918 = sst [smem:[#allocation22_spill]] %s1548_s29  ;;  %p1104_p0 = scmp.ge.s32.totalorder %s1560_s10, 1 }
  0x14   : > { %1919 = sst [smem:[#allocation23_spill]] %s1556_s9  ;;  %p67_p1 = scmp.eq.s32.totalorder %s1649_s11, 0 }
  0x15   : > { %1920 = sst [smem:[#allocation24_spill]] %s1560_s10  ;;  %p269_p2 = scmp.lt.s32.totalorder %s1560_s10, 3 }
  0x16   : > { %s1921_s3 = sld [smem:[#allocation29_spill]]  ;;  %s1562_s16 = smov [#allocation10]  }
  0x17   : > { %p1657_p3 = pnand %p1104_p0, %p269_p2  ;;  %s282_s17 = sshll.u32 %s1562_s16, 4  ;;  %s283_s17 = int_to_ptr.vmem [resolvable:$true] %s282_s17 }
  0x18   : > { %s1900_s19 = smov 64   ;;  %s1901_s20 = smov 4  }
  0x19   : > { %p1181_p4 = pneg %p1657_p3  ;;  %s1103_s21 = sadd.s32 4294967294, %s1560_s10  }
  0x1a   : > { %s44_s22 = sadd.s32 1, %s1556_s9  ;;  %s53_s23 = sadd.s32 1, %s1548_s29 }
  0x1b   : > { %p1665_p5 = pnand %p1181_p4, %p67_p1  ;;  %p46_p7 = scmp.ge.s32.totalorder %s44_s22, 2 }
  0x1c   : > { %s280_s14 = sshll.u32 %s1921_s3, 4  ;;  %p60_p8 = scmp.ne.s32.totalorder %s1548_s29, %s1544_s28  ;;  %s281_s14 = int_to_ptr.hbm [resolvable:$true] %s280_s14 }
  0x1d   : > { %1184 = dma.hbm_to_vmem [thread:$0]  (!%p1665_p5), %s281_s14, 256, %s283_s17, [#allocation11], %s1900_s19, %s1900_s19, %s1901_s20  }
  0x1e   : > { %p61_p9 = scmp.eq.s32.totalorder %s1560_s10, 0  ;;  %p66_p10 = scmp.ne.s32.totalorder %s1544_s28, %s1540_s27 }
  0x1f   : > { %s1950_s22 = smov (%p46_p7, %s44_s22), 0  ;;  %p228_p13 = scmp.eq.s32.totalorder %s1649_s11, 1 }
  0x20   : > { %1924 = sst [smem:[#allocation25_spill]] %s1950_s22  ;;  %p1685_p11 = por %p61_p9, %p60_p8 }
  0x21   : > { %p1691_p12 = por %p67_p1, %p66_p10  ;;  %s48_s26 = ssub.s32 %s1556_s9, %s1950_s22 }
  0x22   : > { %p51_p0 = scmp.eq.s32.totalorder %s48_s26, 0  ;;  %p234_p2 = scmp.eq.s32.totalorder %s1103_s21, 1 }
  0x23   : > { %p1698_p4 = por %p228_p13, %p60_p8  ;;  %p1207_p7 = scmp.lt.s32.totalorder %s1560_s10, 2 }
  0x24   : > { %s1704_s13 = scalar_select %p51_p0, %s1548_s29, %s53_s23  }
  0x25   : > { %p1706_p9 = por %p234_p2, %p66_p10  ;;  %s316_s16 = sand.u32 1, %s1548_s29  }
  0x26   : > { %1928 = sst [smem:[#allocation26_spill]] %s1704_s13  ;;  %s1711_s17 = sshll.u32 %s316_s16, 2 }
  0x27   : > { %s1929_s14 = scalar_select %p1706_p9, 1, 0 }
  0x28   : > { %s1109_s19 = sshll.u32 %s1556_s9, 2  ;;  %p1716_p6 = pnand %p1207_p7, %p1685_p11 }
  0x29   : > { %1930 = sst [smem:[#allocation27_spill]] %s1929_s14  ;;  %s336_s26 = sand.u32 1, %s1560_s10  }
  0x2a   : > { %s1932_s1 = sld [smem:[#allocation28_spill]]  ;;  %s340_s13 = scalar_lea.vmem [#allocation7], %s1711_s17 }
  0x2b   : > { %s348_s29 = sshll.u32 %s340_s13, 4  ;;  %s337_s9 = scalar_lea.sflag [#allocation8], %s336_s26  ;;  %s349_s29 = int_to_ptr.vmem [resolvable:$true] %s348_s29 }
  0x2c   : > { %s1933_s4 = sld [smem:[#allocation30_spill]]  ;;  %s1565_s10 = smov [#allocation12]  }
  0x2d   : > { %s296_s6 = sshll.u32 %s1565_s10, 4  ;;  %s1934_s20 = smov 4   ;;  %s297_s6 = int_to_ptr.vmem [resolvable:$true] %s296_s6 }
  0x2e   : > { %s325_s26 = scalar_lea.hbm %s1891_s0, %s1109_s19  ;;  %s317_s14 = scalar_lea.sflag [#allocation5], %s316_s16 }
  0x2f   : > { %s363_s18 = scalar_lea.hbm %s1893_s2, %s1109_s19  ;;  %s359_s7 = scalar_lea.vmem [#allocation9], %s1711_s17 }
  0x30   : > { %s344_s3 = scalar_lea.hbm %s1932_s1, %s1109_s19  ;;  %s367_s8 = sshll.u32 %s359_s7, 4  ;;  %s368_s8 = int_to_ptr.vmem [resolvable:$true] %s367_s8 }
  0x31   : > { %s346_s22 = sshll.u32 %s344_s3, 4  ;;  %s1935_s3 = smov 64   ;;  %s347_s22 = int_to_ptr.hbm [resolvable:$true] %s346_s22 }
  0x32   : > { %1194 = dma.hbm_to_vmem [thread:$0]  (!%p1716_p6), %s347_s22, 64, %s349_s29, %s337_s9  }
  0x33   : > { %s294_s27 = sshll.u32 %s1933_s4, 4  ;;  %s327_s29 = sshll.u32 %s325_s26, 4  ;;  %s295_s27 = int_to_ptr.hbm [resolvable:$true] %s294_s27  ;;  %s328_s29 = int_to_ptr.hbm [resolvable:$true] %s327_s29 }
  0x34   : > { %1187 = dma.hbm_to_vmem [thread:$0]  (!%p1665_p5), %s295_s27, 256, %s297_s6, [#allocation11], %s1935_s3, %s1935_s3, %s1934_s20  }
  0x35   : > { %s320_s22 = scalar_lea.vmem [#allocation4], %s1711_s17  ;;  %s365_s4 = sshll.u32 %s363_s18, 4  ;;  %s366_s4 = int_to_ptr.hbm [resolvable:$true] %s365_s4 }
  0x36   : > { %s329_s1 = sshll.u32 %s320_s22, 4  ;;  %376 = sbr.rel (%p1657_p3) target bundleno = 1166 (0x48e), region = 48  ;;  %s330_s1 = int_to_ptr.vmem [resolvable:$true] %s329_s1 }
  0x37   : > { %1191 = dma.hbm_to_vmem [thread:$0]  (!%p1716_p6), %s328_s29, 64, %s330_s1, %s317_s14  }
  0x38   : > { %1197 = dma.hbm_to_vmem [thread:$0]  (!%p1716_p6), %s366_s4, 64, %s368_s8, %s337_s9  }
  0x39   : > { %s1750_s6 = sand.u32 (!%p1657_p3), 1, %s1544_s28  }
  0x3a   : > { %s1115_s1 = sshll.u32 (!%p1657_p3), %s1750_s6, 2  ;;  %s379_s27 = scalar_lea.sflag (!%p1657_p3), [#allocation5], %s1750_s6 }
  0x3b   : > { %s382_s16 = scalar_lea.vmem [#allocation4], %s1115_s1 }
  0x3c   : > { %1519 = dma.done.wait (%p1691_p12), %s379_s27, 64  }
  0x3d   : > { %1521 = vsyncadd (%p1691_p12), %s379_s27, 4294967232  ;;  %s388_s4 = sand.u32 1, %s1649_s11   ;;  %s392_s8 = scalar_lea.vmem [#allocation7], %s1115_s1 }
  0x3e   : > { %s389_s7 = scalar_lea.sflag [#allocation8], %s388_s4 }
  0x3f   : > { %1523 = dma.done.wait (%p1691_p12), %s389_s7, 128  }
  0x40   : > { %1525 = vsyncadd (%p1691_p12), %s389_s7, 4294967168  ;;  %s1763_s9 = scalar_lea.vmem [#allocation9], %s1115_s1 }
  0x41   : > { %1527 = dma.done.wait (%p67_p1), [#allocation11], 512  }
  0x42   : > { %1529 = vsyncadd (%p67_p1), [#allocation11], 4294966784  ;;  %v1159_v0 = vld [vmem:[#allocation10 + $0x8] sm:$0xff]  ;;  %v1158_v1 = vld [vmem:[#allocation10] sm:$0xff]  ;;  %vm484_vm0 = vcmask 261120   ;;  %vm508_vm1 = vcmask 64512  }
  0x43   : > { %494 = vmatpush.bf16.msra.mxu0 %v1159_v0  ;;  %v463_v2 = vld [vmem:[%s382_s16] sm:$0xf]  ;;  %v506_v3 = vld [vmem:[%s392_s8] sm:$0xf]  ;;  %s1566_s11 = smov 104   ;;  %s1567_s15 = smov 112  }
  0x44   : > { %v758_v4 = vld [vmem:[%s392_s8] sm:$0xf]  ;;  %v513_v5 = vsel %vm508_vm1, %v506_v3, 0  ;;  %s1568_s19 = smov 120   ;;  %v1270_v14 = vld [vmem:[%s1896_s5] ss:$0 sm:$0xff] }
  0x45   : > { %v766_v6 = vunpack.c.l.b16 %v758_v4  ;;  %v668_v7 = vld [vmem:[%s392_s8] sm:$0xf]  ;;  %522 = vmatpush.bf16.xpose.msra.mxu1 %v513_v5  ;;  %vm503_vm2 = vcmask 257024   ;;  %v507_v56 = vld [vmem:[%s1763_s9] sm:$0xf]  ;;  %vm557_vm3 = vcmask 1043456  }
  0x46   : > { %v578_v8 = vld [vmem:[%s392_s8] sm:$0xf]  ;;  %v676_v9 = vunpack.c.l.b16 %v668_v7  ;;  %v559_v57 = vsel %vm557_vm3, %v507_v56, 0  ;;  %v579_v63 = vld [vmem:[%s1763_s9] sm:$0xf]  ;;  %s1121_s21 = sshll.u32 %s1750_s6, 5 }
  0x47   : > { %495 = vmatpush.bf16.msra.mxu0 %v1158_v1  ;;  %v586_v10 = vunpack.c.l.b16 %v578_v8  ;;  %v767_v11 = vpack.c.b16 %v766_v6, %v766_v6  ;;  %568 = vmatpush.bf16.msra.mxu2 %v559_v57  ;;  %s1797_s20 = scalar_lea.vmem [#allocation14], %s1121_s21  ;;  %vm575_vm8 = vcmask 60416   ;;  %s1569_s3 = smov 8  }
  0x48   : > { %v677_v12 = vpack.c.b16 %v676_v9, %v676_v9  ;;  %s1570_s13 = smov 16   ;;  %s1571_s23 = smov 24  }
  0x49   : > { %v587_v13 = vpack.c.b16 %v586_v10, %v586_v10  ;;  %768 = vrot.lane.b32.xlu1 %v767_v11, %s1566_s11  ;;  %s1162_s26 = sshll.u32 %s1552_s30, 5  ;;  %s1936_s14 = sld [smem:[#allocation33_spill]] }
  0x4a   : > { %1130 = vmatmul.msk.bf16.vlgmr.msra.gmra.mxu0 %vm484_vm0, %v463_v2  ;;  %678 = vrot.lane.b32.xlu2 %v677_v12, %s1567_s15  ;;  %v637_v2 = vunpack.c.l.b16 %v579_v63  ;;  %s919_s24 = sshll.u32 %s1797_s20, 4  ;;  %s891_s1 = scalar_lea.sflag [#allocation15], %s1750_s6  ;;  %s920_s24 = int_to_ptr.vmem [resolvable:$true] %s919_s24 }
  0x4b   : > { %588 = vrot.lane.b32.xlu0 %v587_v13, %s1568_s19 }
  0x4c   : > { %v638_v5 = vpack.c.b16 %v637_v2, %v637_v2 }
  0x4f   : > { %s918_s10 = scalar_lea.hbm %s1936_s14, %s1162_s26  ;;  %s1458_s8 = scalar_lea.hbm %s1936_s14, 64 }
  0x50   : > { %s921_s18 = sshll.u32 %s918_s10, 4  ;;  %s922_s18 = int_to_ptr.hbm [resolvable:$true] %s921_s18 }
  0x51   : > { %s1452_s27 = sshra.s32 %s922_s18, 4  ;;  %s1453_s27 = int_to_ptr.hbm [resolvable:$true] %s1452_s27 }
  0x52   : > { %s1454_s16 = scalar_lea.hbm %s1453_s27, 32  ;;  %p1459_p6 = scmp.lt.s32.totalorder %s1453_s27, %s1936_s14 }
  0x53   : > { %p1455_p1 = scmp.ne.s32.totalorder %s1453_s27, %s1454_s16  ;;  %p1460_p8 = scmp.lt.s32.totalorder %s1458_s8, %s1454_s16 }
  0x55   : > { %p1456_p3 = pnand %p1455_p1, %p1698_p4  ;;  %p1461_p10 = por %p1460_p8, %p1459_p6 }
  0x57   : > { %p1457_p5 = pneg %p1456_p3 }
  0x59   : > { %p1462_p11 = pnand %p1461_p10, %p1457_p5 }
  0xa4   : > { %v679_v30 = vpop.permute.xlu2 %678 }
  0xa5   : > { %v684_v31 = vsel %vm508_vm1, %v679_v30, 0 }
  0xa6   : > { %693 = vmatpush.bf16.xpose.msrb.mxu0 %v684_v31 }
  0xbb   : > { %v769_v34 = vpop.permute.xlu1 %768 }
  0xbc   : > { %v774_v35 = vsel %vm508_vm1, %v769_v34, 0 }
  0xbd   : > { %v589_v32 = vpop.permute.xlu0 %588 }
  0xbe   : > { %v594_v33 = vsel %vm508_vm1, %v589_v32, 0 }
  0xbf   : > { %603 = vmatpush.bf16.xpose.msra.mxu3 %v594_v33 }
  0xc7   : > { %v497_v15 = vpop.f32.mrf.mxu0  ;;  %783 = vmatpush.bf16.xpose.msrb.mxu3 %v774_v35 }
  0xc8   : > { %v498_v16 = vadd.f32 %v1270_v14, %v497_v15 }
  0xca   : > { %v501_v17 = vmul.f32 0.35355338, %v498_v16 }
  0xcc   : > { %v502_v18 = vpack.c.bf16 %v501_v17, %v501_v17 }
  0xce   : > { %504 = vst.msk [vmem:[#allocation2] sm:$0xf] %vm503_vm2, %v502_v18 }
  0xcf   : > { %v499_v19 = vpop.f32.mrf.mxu0 }
  0xd5   : > { %v505_v20 = vld [vmem:[#allocation2] sm:$0xf] }
  0xd6   : > { %v757_v21 = vld [vmem:[#allocation2] sm:$0xf]  ;;  %1131 = vmatmul.msk.bf16.vlgmr.msra.gmra.mxu1 %vm508_vm1, %v505_v20 }
  0xd7   : > { %v667_v22 = vld [vmem:[#allocation2] sm:$0xf]  ;;  %v761_v23 = vunpack.c.l.b16 %v757_v21 }
  0xd8   : > { %v671_v24 = vunpack.c.l.b16 %v667_v22  ;;  %v577_v25 = vld [vmem:[#allocation2] sm:$0xf] }
  0xd9   : > { %v581_v26 = vunpack.c.l.b16 %v577_v25  ;;  %v762_v27 = vpack.c.b16 %v761_v23, %v761_v23 }
  0xda   : > { %v672_v28 = vpack.c.b16 %v671_v24, %v671_v24  ;;  %v759_v24 = vld [vmem:[%s1763_s9] sm:$0xf] }
  0xdb   : > { %v582_v29 = vpack.c.b16 %v581_v26, %v581_v26  ;;  %763 = vrot.lane.b32.xlu1 %v762_v27, %s1566_s11  ;;  %v817_v26 = vunpack.c.l.b16 %v759_v24  ;;  %v1161_v24 = vld [vmem:[#allocation12 + $0x8] sm:$0xff] }
  0xdc   : > { %673 = vrot.lane.b32.xlu2 %v672_v28, %s1567_s15  ;;  %v669_v28 = vld [vmem:[%s1763_s9] sm:$0xf]  ;;  %877 = vmatpush.bf16.msra.mxu0 %v1161_v24 }
  0xdd   : > { %583 = vrot.lane.b32.xlu0 %v582_v29, %s1568_s19  ;;  %v818_v27 = vpack.c.b16 %v817_v26, %v817_v26  ;;  %v727_v29 = vunpack.c.l.b16 %v669_v28 }
  0xdf   : > { %v728_v30 = vpack.c.b16 %v727_v29, %v727_v29 }
 0x136   : > { %v674_v36 = vpop.permute.xlu2 %673 }
 0x137   : > { %1136 = vmatmul.msk.bf16.vlgmr.msrb.gmra.mxu0 %vm508_vm1, %v674_v36 }
 0x14d   : > { %v764_v41 = vpop.permute.xlu1 %763 }
 0x14f   : > { %v584_v37 = vpop.permute.xlu0 %583 }
 0x150   : > { %1133 = vmatmul.msk.bf16.vlgmr.msra.gmra.mxu3 %vm508_vm1, %v584_v37 }
 0x153   : > { %v524_v38 = vpop.f32.mrf.mxu1 }
 0x154   : > { %v528_v39 = vsel %vm508_vm1, %v524_v38, -inf }
 0x155   : > { %529 = vmax.xlane.f32.xlu0 %v528_v39 }
 0x15b   : > { %v526_v40 = vpop.f32.mrf.mxu1 }
 0x160   : > { %1139 = vmatmul.msk.bf16.vlgmr.msrb.gmra.mxu3 %vm508_vm1, %v764_v41 }
 0x1b4   : > { %v695_v42 = vpop.f32.mrf.mxu0 }
 0x1b5   : > { %v699_v55 = vsel %vm508_vm1, %v695_v42, -inf }
 0x1bc   : > { %v697_v43 = vpop.f32.mrf.mxu0 }
 0x1c8   : > { %v530_v44 = vpop.xlane.xlu0 %529 }
 0x1c9   : > { %v531_v45 = vsub.f32 %v524_v38, %v530_v44 }
 0x1cb   : > { %v532_v46 = vmul.f32 1.442695, %v531_v45 }
 0x1cd   : > { %1272 = vpow2.f32 %v532_v46 }
 0x1d3   : > { %v605_v47 = vpop.f32.mrf.mxu3  ;;  %v1273_v49 = vpop.eup %1272 }
 0x1d4   : > { %v609_v48 = vsel %vm508_vm1, %v605_v47, -inf  ;;  %v534_v50 = vsel %vm508_vm1, %v1273_v49, 0.0 }
 0x1d5   : > { %610 = vmax.xlane.f32.xlu1 %v609_v48  ;;  %535 = vadd.xlane.f32.xlu0 %v534_v50 }
 0x1db   : > { %v607_v51 = vpop.f32.mrf.mxu3 }
 0x1e3   : > { %v785_v52 = vpop.f32.mrf.mxu3 }
 0x1e4   : > { %v789_v53 = vsel %vm508_vm1, %v785_v52, -inf }
 0x1e5   : > { %790 = vmax.xlane.f32.xlu2 %v789_v53 }
 0x1e9   : > { %639 = vrot.lane.b32.xlu0 %v638_v5, %s1568_s19 }
 0x1eb   : > { %v787_v54 = vpop.f32.mrf.mxu3 }
 0x1ed   : > { %700 = vmax.xlane.f32.xlu2 %v699_v55 }
 0x248   : > { %v536_v58 = vpop.xlane.xlu0 %535  ;;  %v611_v13 = vpop.xlane.xlu1 %610 }
 0x249   : > { %1274 = vrcp.f32 %v536_v58  ;;  %v548_v62 = vand.u32 2147483648, %v536_v58  ;;  %v546_v1 = vand.u32 2147483647, %v536_v58  ;;  %vm542_vm5 = vweird.f32 %v536_v58 }
 0x24a   : > { %v612_v17 = vsub.f32 %v605_v47, %v611_v13 }
 0x24b   : > { %v549_v6 = vor.u32 1.1754944e-38, %v548_v62  ;;  %vm547_vm7 = vcmp.eq.f32.partialorder %v546_v1, 8.507059e+37 }
 0x24c   : > { %v613_v20 = vmul.f32 1.442695, %v612_v17 }
 0x24f   : > { %v1275_v59 = vpop.eup %1274 }
 0x250   : > { %v538_v60 = vmul.f32 %v1275_v59, %v536_v58  ;;  %vm543_vm4 = vweird.f32 %v1275_v59 }
 0x251   : > { %vm544_vm6 = vmor %vm542_vm5, %vm543_vm4 }
 0x252   : > { %v539_v61 = vsub.f32 1.0, %v538_v60 }
 0x254   : > { %v540_v0 = vmul.f32 %v1275_v59, %v539_v61 }
 0x256   : > { %v541_v3 = vadd.f32 %v1275_v59, %v540_v0 }
 0x258   : > { %v791_v4 = vpop.xlane.xlu2 %790  ;;  %v545_v8 = vsel %vm544_vm6, %v1275_v59, %v541_v3 }
 0x259   : > { %v792_v7 = vsub.f32 %v785_v52, %v791_v4  ;;  %v550_v10 = vsel %vm547_vm7, %v549_v6, %v545_v8 }
 0x25a   : > { %v551_v11 = vmul.f32 %v1273_v49, %v550_v10 }
 0x25b   : > { %v793_v9 = vmul.f32 1.442695, %v792_v7  ;;  %v640_v32 = vpop.permute.xlu0 %639 }
 0x25c   : > { %552 = vst.msk [vmem:[%s1797_s20] sm:$0xff] %vm508_vm1, %v551_v11  ;;  %v553_v12 = vpack.c.bf16 %v551_v11, %v551_v11  ;;  %v645_v33 = vsel %vm557_vm3, %v640_v32, 0 }
 0x25d   : > { %1276 = vpow2.f32 %v793_v9  ;;  %654 = vmatpush.bf16.msrb.mxu2 %v645_v33 }
 0x25e   : > { %1132 = vmatmul.msk.bf16.vlgmr.msra.gmra.mxu2 %vm508_vm1, %v553_v12 }
 0x260   : > { %v701_v14 = vpop.xlane.xlu2 %700 }
 0x261   : > { %v702_v15 = vsub.f32 %v695_v42, %v701_v14 }
 0x263   : > { %v1277_v16 = vpop.eup %1276  ;;  %v703_v18 = vmul.f32 1.442695, %v702_v15 }
 0x264   : > { %v795_v19 = vsel %vm508_vm1, %v1277_v16, 0.0 }
 0x265   : > { %1278 = vpow2.f32 %v703_v18  ;;  %796 = vadd.xlane.f32.xlu2 %v795_v19 }
 0x266   : > { %1280 = vpow2.f32 %v613_v20 }
 0x26b   : > { %v1803_v21 = vpop.eup %1278 }
 0x26c   : > { %v705_v22 = vsel %vm508_vm1, %v1803_v21, 0.0  ;;  %v1807_v23 = vpop.eup %1280 }
 0x26d   : > { %706 = vadd.xlane.f32.xlu1 %v705_v22  ;;  %v615_v25 = vsel %vm508_vm1, %v1807_v23, 0.0 }
 0x275   : > { %616 = vadd.xlane.f32.xlu1 %v615_v25  ;;  %v1160_v25 = vld [vmem:[#allocation12] sm:$0xff] }
 0x276   : > { %878 = vmatpush.bf16.msra.mxu0 %v1160_v25 }
 0x27d   : > { %819 = vrot.lane.b32.xlu2 %v818_v27, %s1566_s11 }
 0x28e   : > { %729 = vrot.lane.b32.xlu1 %v728_v30, %s1567_s15 }
 0x2d8   : > { %v797_v31 = vpop.xlane.xlu2 %796 }
 0x2d9   : > { %1282 = vrcp.f32 %v797_v31  ;;  %v809_v38 = vand.u32 2147483648, %v797_v31  ;;  %v807_v41 = vand.u32 2147483647, %v797_v31  ;;  %vm803_vm10 = vweird.f32 %v797_v31 }
 0x2db   : > { %v810_v47 = vor.u32 1.1754944e-38, %v809_v38  ;;  %vm808_vm12 = vcmp.eq.f32.partialorder %v807_v41, 8.507059e+37 }
 0x2df   : > { %v1283_v34 = vpop.eup %1282 }
 0x2e0   : > { %v799_v35 = vmul.f32 %v1283_v34, %v797_v31  ;;  %v707_v36 = vpop.xlane.xlu1 %706  ;;  %vm804_vm9 = vweird.f32 %v1283_v34  ;;  %v820_v43 = vpop.permute.xlu2 %819 }
 0x2e1   : > { %1284 = vrcp.f32 %v707_v36  ;;  %v570_v39 = vpop.f32.mrf.mxu2  ;;  %v825_v45 = vsel %vm557_vm3, %v820_v43, 0  ;;  %vm805_vm11 = vmor %vm803_vm10, %vm804_vm9  ;;  %v719_v54 = vand.u32 2147483648, %v707_v36  ;;  %v717_v57 = vand.u32 2147483647, %v707_v36 }
 0x2e2   : > { %v800_v37 = vsub.f32 1.0, %v799_v35  ;;  %v574_v42 = vpack.c.bf16 %v570_v39, %v570_v39  ;;  %834 = vmatpush.bf16.msra.mxu2 %v825_v45  ;;  %vm713_vm14 = vweird.f32 %v707_v36 }
 0x2e3   : > { %v720_v60 = vor.u32 1.1754944e-38, %v719_v54  ;;  %vm718_vm2 = vcmp.eq.f32.partialorder %v717_v57, 8.507059e+37 }
 0x2e4   : > { %v801_v40 = vmul.f32 %v1283_v34, %v800_v37  ;;  %576 = vst.msk [vmem:[#allocation3] sm:$0xf] %vm575_vm8, %v574_v42  ;;  %vm845_vm8 = vcmask 257216  }
 0x2e6   : > { %v802_v44 = vadd.f32 %v1283_v34, %v801_v40 }
 0x2e7   : > { %v1285_v46 = vpop.eup %1284 }
 0x2e8   : > { %v806_v48 = vsel %vm805_vm11, %v1283_v34, %v802_v44  ;;  %v709_v49 = vmul.f32 %v1285_v46, %v707_v36  ;;  %v617_v50 = vpop.xlane.xlu1 %616  ;;  %vm714_vm13 = vweird.f32 %v1285_v46 }
 0x2e9   : > { %v811_v51 = vsel %vm808_vm12, %v810_v47, %v806_v48  ;;  %1286 = vrcp.f32 %v617_v50  ;;  %v572_v55 = vpop.f32.mrf.mxu2  ;;  %vm715_vm15 = vmor %vm713_vm14, %vm714_vm13  ;;  %v629_v2 = vand.u32 2147483648, %v617_v50  ;;  %v627_v4 = vand.u32 2147483647, %v617_v50 }
 0x2ea   : > { %v812_v52 = vmul.f32 %v1277_v16, %v811_v51  ;;  %v710_v53 = vsub.f32 1.0, %v709_v49  ;;  %vm623_vm5 = vweird.f32 %v617_v50 }
 0x2eb   : > { %v630_v6 = vor.u32 1.1754944e-38, %v629_v2  ;;  %vm628_vm7 = vcmp.eq.f32.partialorder %v627_v4, 8.507059e+37 }
 0x2ec   : > { %1140 = vst.msk [vmem:[%s1797_s20 + $0x18] sm:$0xff] %vm508_vm1, %v812_v52  ;;  %v711_v56 = vmul.f32 %v1285_v46, %v710_v53  ;;  %v815_v14 = vpack.c.bf16 %v812_v52, %v812_v52 }
 0x2ee   : > { %v712_v58 = vadd.f32 %v1285_v46, %v711_v56 }
 0x2ef   : > { %v1287_v59 = vpop.eup %1286 }
 0x2f0   : > { %v716_v61 = vsel %vm715_vm15, %v1285_v46, %v712_v58  ;;  %v619_v62 = vmul.f32 %v1287_v59, %v617_v50  ;;  %vm624_vm4 = vweird.f32 %v1287_v59 }
 0x2f1   : > { %v721_v63 = vsel %vm718_vm2, %v720_v60, %v716_v61  ;;  %vm625_vm6 = vmor %vm623_vm5, %vm624_vm4 }
 0x2f2   : > { %v620_v0 = vsub.f32 1.0, %v619_v62  ;;  %v722_v1 = vmul.f32 %v1803_v21, %v721_v63 }
 0x2f4   : > { %v621_v3 = vmul.f32 %v1287_v59, %v620_v0  ;;  %1137 = vst.msk [vmem:[%s1797_s20 + $0x10] sm:$0xff] %vm508_vm1, %v722_v1  ;;  %v725_v13 = vpack.c.bf16 %v722_v1, %v722_v1 }
 0x2f6   : > { %v622_v5 = vadd.f32 %v1287_v59, %v621_v3 }
 0x2f8   : > { %v626_v7 = vsel %vm625_vm6, %v1287_v59, %v622_v5 }
 0x2f9   : > { %v631_v8 = vsel %vm628_vm7, %v630_v6, %v626_v7 }
 0x2fa   : > { %v632_v9 = vmul.f32 %v1807_v23, %v631_v8 }
 0x2fc   : > { %1134 = vst.msk [vmem:[%s1797_s20 + $0x8] sm:$0xff] %vm508_vm1, %v632_v9  ;;  %v635_v10 = vpack.c.bf16 %v632_v9, %v632_v9 }
 0x2fe   : > { %1135 = vmatmul.msk.bf16.vlgmr.msrb.gmra.mxu2 %vm508_vm1, %v635_v10 }
 0x300   : > { %v730_v11 = vpop.permute.xlu1 %729 }
 0x301   : > { %v735_v12 = vsel %vm557_vm3, %v730_v11, 0  ;;  %vm755_vm3 = vcmask 191616  }
 0x302   : > { %744 = vmatpush.bf16.msrb.mxu1 %v735_v12 }
 0x305   : > { %1138 = vmatmul.msk.bf16.vlgmr.msrb.gmra.mxu1 %vm508_vm1, %v725_v13 }
 0x30e   : > { %1141 = vmatmul.msk.bf16.vlgmr.msra.gmra.mxu2 %vm508_vm1, %v815_v14  ;;  %vm665_vm1 = vcmask 126016  }
 0x381   : > { %v656_v15 = vpop.f32.mrf.mxu2 }
 0x382   : > { %v660_v16 = vpack.c.bf16 %v656_v15, %v656_v15  ;;  %v746_v17 = vpop.f32.mrf.mxu1 }
 0x383   : > { %v750_v19 = vpack.c.bf16 %v746_v17, %v746_v17 }
 0x384   : > { %662 = vrot.lane.b32.xlu0 %v660_v16, %s1569_s3 }
 0x389   : > { %v658_v18 = vpop.f32.mrf.mxu2 }
 0x38a   : > { %v748_v20 = vpop.f32.mrf.mxu1 }
 0x38c   : > { %752 = vrot.lane.b32.xlu0 %v750_v19, %s1570_s13 }
 0x391   : > { %v836_v21 = vpop.f32.mrf.mxu2 }
 0x392   : > { %v840_v22 = vpack.c.bf16 %v836_v21, %v836_v21 }
 0x394   : > { %842 = vrot.lane.b32.xlu2 %v840_v22, %s1571_s23 }
 0x399   : > { %v838_v23 = vpop.f32.mrf.mxu2 }
 0x3ee   : > { %v843_v28 = vpop.permute.xlu2 %842 }
 0x3f6   : > { %v663_v26 = vpop.permute.xlu0 %662 }
 0x3f7   : > { %666 = vst.msk [vmem:[#allocation3] sm:$0xf] %vm665_vm1, %v663_v26 }
 0x3fe   : > { %v753_v27 = vpop.permute.xlu0 %752 }
 0x3ff   : > { %756 = vst.msk [vmem:[#allocation3] sm:$0xf] %vm755_vm3, %v753_v27 }
 0x400   : > { %846 = vst.msk [vmem:[#allocation3] sm:$0xf] %vm845_vm8, %v843_v28 }
 0x407   : > { %v847_v29 = vld [vmem:[#allocation3] sm:$0xf] }
 0x408   : > { %1150 = vmatmul.msk.bf16.vlgmr.msra.gmra.mxu0 %vm484_vm0, %v847_v29 }
 0x409   : > { %1465 = shalt.err (!%p1462_p11)
}
 0x40a   : > { %s1572_s15 = smov 128   ;;  %s1153_s19 = sshll.u32 %s1552_s30, 3 }
 0x40b   : > { %1178 = dma.vmem_to_hbm [thread:$0]  (%p1698_p4), %s920_s24, 512, %s922_s18, %s891_s1, %s1572_s15, %s1572_s15, %s1569_s3  }
 0x40c   : > { %s1120_s25 = sshll.u32 %s1750_s6, 3  ;;  %s1937_s20 = sld [smem:[#allocation32_spill]] }
 0x40d   : > { %s1938_s29 = sld [smem:[#allocation31_spill]]  ;;  %s453_s22 = scalar_lea.vmem [#allocation13], %s1120_s25 }
 0x40e   : > { %s904_s10 = sshll.u32 %s453_s22, 4  ;;  %s886_s30 = scalar_lea.sflag [#allocation6], %s1750_s6  ;;  %s905_s10 = int_to_ptr.vmem [resolvable:$true] %s904_s10 }
 0x412   : > { %s902_s13 = scalar_lea.hbm %s1937_s20, %s1153_s19  ;;  %s1486_s16 = scalar_lea.hbm %s1937_s20, 16 }
 0x413   : > { %v1271_v30 = vld [vmem:[%s1938_s29] ss:$0 sm:$0xff]  ;;  %s906_s27 = sshll.u32 %s902_s13, 4  ;;  %s907_s27 = int_to_ptr.hbm [resolvable:$true] %s906_s27 }
 0x414   : > { %s1480_s3 = sshra.s32 %s907_s27, 4  ;;  %s1481_s3 = int_to_ptr.hbm [resolvable:$true] %s1480_s3 }
 0x415   : > { %s1482_s24 = scalar_lea.hbm %s1481_s3, 8  ;;  %p1487_p2 = scmp.lt.s32.totalorder %s1481_s3, %s1937_s20 }
 0x416   : > { %p1483_p12 = scmp.ne.s32.totalorder %s1481_s3, %s1482_s24  ;;  %p1488_p7 = scmp.lt.s32.totalorder %s1486_s16, %s1482_s24 }
 0x418   : > { %p1484_p13 = pnand %p1483_p12, %p1698_p4  ;;  %p1489_p1 = por %p1488_p7, %p1487_p2 }
 0x41a   : > { %p1485_p0 = pneg %p1484_p13 }
 0x41c   : > { %p1490_p3 = pnand %p1489_p1, %p1485_p0 }
 0x485   : > { %v880_v31 = vpop.f32.mrf.mxu0 }
 0x486   : > { %v881_v32 = vadd.f32 %v1271_v30, %v880_v31 }
 0x488   : > { %884 = vst.msk [vmem:[%s453_s22] sm:$0xff] %vm484_vm0, %v881_v32 }
 0x489   : > { %1493 = shalt.err (!%p1490_p3)
}
 0x48a   : > { %1177 = dma.vmem_to_hbm [thread:$0]  (%p1698_p4), %s905_s10, 128, %s907_s27, %s886_s30  }
 0x48d   : > { %v882_v33 = vpop.f32.mrf.mxu0 }
 0x48e PF: > { %s1939_s6 = sld [smem:[#allocation21_spill]] }
 0x48f   : > { %s1941_s9 = sld [smem:[#allocation24_spill]] }
 0x494   : > { %s936_s11 = sand.u32 1, %s1939_s6  }
 0x495   : > { %p1942_p5 = scmp.ge.s32.totalorder %s1941_s9, 2  ;;  %s937_s15 = scalar_lea.sflag [#allocation6], %s936_s11 }
 0x497   : > { %p1199_p6 = pnand %p1942_p5, %p1706_p9 }
 0x499   : > { %p1200_p8 = pneg %p1199_p6 }
 0x49b   : > { %1531 = dma.done.wait (%p1200_p8), %s937_s15, 128  }
 0x49c   : > { %1533 = vsyncadd (%p1200_p8), %s937_s15, 4294967168  ;;  %s947_s19 = scalar_lea.sflag [#allocation15], %s936_s11 }
 0x49d   : > { %1535 = dma.done.wait (%p1200_p8), %s947_s19, 512  }
 0x49e   : > { %1537 = vsyncadd (%p1200_p8), %s947_s19, 4294966784  ;;  %s32_s10 = sadd.s32 1, %s1941_s9   ;;  %s1943_s12 = sld [smem:[#allocation22_spill]] }
 0x49f   : > { %p29_p10 = scmp.ge.s32.totalorder %s32_s10, 4   ;;  %s1944_s29 = sld [smem:[#allocation26_spill]] }
 0x4a0   : > { %s1945_s30 = sld [smem:[#allocation23_spill]]  ;;  %s1947_s27 = smov %s1544_s28 }
 0x4a1   : > { %s1946_s9 = sld [smem:[#allocation25_spill]]  ;;  %31 = sbr.rel (!%p29_p10) target bundleno = 18 (0x12), region = 145 }
 0x4a4   : > { %s1948_s28 = smov %s1943_s12 }
 0x4a6   :  { %953 = vsyncpa [#allocation5], 1 }
 0x4a7   :  { %955 = vsyncpa [#allocation5 + $0x1], 1 }
 0x4a8   :  { %956 = vsyncpa [#allocation8], 1 }
 0x4a9   :  { %958 = vsyncpa [#allocation8 + $0x1], 1 }
 0x4aa   :  { %959 = vsyncpa [#allocation11], 1 }
 0x4ab   :  { %960 = vsyncpa [#allocation6], 1 }
 0x4ac   :  { %962 = vsyncpa [#allocation6 + $0x1], 1 }
 0x4ad   :  { %963 = vsyncpa [#allocation15], 1 }
 0x4ae   :  { %965 = vsyncpa [#allocation15 + $0x1], 1 }

</bundles_post_ra>
